<compile_context>
chip_gen: v6e
topology: v6e:2x2x1
jax: 0.10.0
libtpu: 0.0.40
codegen_flags: <defaults>
</compile_context>

<pallas_src>
import functools

import jax
import jax.numpy as jnp
from jax.experimental import pallas as pl
from jax.experimental.pallas import tpu as pltpu

BN_EPS = 1e-5


def _bn_fold(h, gamma, beta):
    """Training-mode BatchNorm1d folded to a single FMA.

    Two-pass mean / biased-variance over the batch (sublane) axis (avoids the
    E[x^2]-mean^2 cancellation of the one-pass form); rsqrt goes to the EUP.
    """
    mean = jnp.mean(h, axis=0, keepdims=True)
    centered = h - mean
    var = jnp.mean(centered * centered, axis=0, keepdims=True)
    scale = gamma * jax.lax.rsqrt(var + BN_EPS)
    return centered * scale + beta


def _rb_fused_kernel(*refs, has_scale):
    """Single-shot kernel (no grid): everything resident in VMEM, no scratch."""
    if has_scale:
        x_ref, ws_ref, w1_ref, g1_ref, b1_ref, w2_ref, g2_ref, b2_ref, o_ref = refs
    else:
        x_ref, w1_ref, g1_ref, b1_ref, w2_ref, g2_ref, b2_ref, o_ref = refs
        ws_ref = None

    xc = x_ref[...].astype(w1_ref.dtype)
    h1 = jnp.dot(xc, w1_ref[...], preferred_element_type=jnp.float32)
    h1 = jnp.maximum(_bn_fold(h1, g1_ref[...], b1_ref[...]), 0.0)
    h2 = jnp.dot(h1.astype(w2_ref.dtype), w2_ref[...],
                 preferred_element_type=jnp.float32)
    h2 = _bn_fold(h2, g2_ref[...], b2_ref[...])
    if has_scale:
        ident = jnp.dot(xc, ws_ref[...], preferred_element_type=jnp.float32)
    else:
        ident = x_ref[...].astype(jnp.float32)
    o_ref[...] = jnp.maximum(h2 + ident, 0.0).astype(o_ref.dtype)


def _rb_tiled_kernel(*refs, has_scale, tn):
    """Feature-tiled kernel: stage 1 once (j == 0), stage 2 per feature tile j."""
    if has_scale:
        (x_ref, ws_ref, w1_ref, g1_ref, b1_ref,
         w2_ref, g2_ref, b2_ref, o_ref, h1_ref) = refs
    else:
        (x_ref, w1_ref, g1_ref, b1_ref,
         w2_ref, g2_ref, b2_ref, o_ref, h1_ref) = refs
        ws_ref = None

    j = pl.program_id(0)

    @pl.when(j == 0)
    def _stage1():
        xc = x_ref[...].astype(w1_ref.dtype)
        h1 = jnp.dot(xc, w1_ref[...], preferred_element_type=jnp.float32)
        h1 = jnp.maximum(_bn_fold(h1, g1_ref[...], b1_ref[...]), 0.0)
        h1_ref[...] = h1.astype(h1_ref.dtype)   # cast once; scratch holds w2 dtype

    # Stage 2: relu(bn2(h1 @ w2[:, tile]) + identity[:, tile])
    h2 = jnp.dot(h1_ref[...], w2_ref[...], preferred_element_type=jnp.float32)
    h2 = _bn_fold(h2, g2_ref[...], b2_ref[...])
    if has_scale:
        ident = jnp.dot(x_ref[...].astype(ws_ref.dtype), ws_ref[...],
                        preferred_element_type=jnp.float32)
    else:
        col = j * tn
        if tn % 128 == 0:
            col = pl.multiple_of(col, 128)       # lane-aligned slice of resident x
        ident = x_ref[:, pl.ds(col, tn)].astype(jnp.float32)
    o_ref[...] = jnp.maximum(h2 + ident, 0.0).astype(o_ref.dtype)


def _vmem_budget():
    """Usable per-TensorCore VMEM budget (capacity minus compiler headroom)."""
    try:
        cap = int(pltpu.get_tpu_info().vmem_capacity_bytes)
    except Exception:
        cap = 64 << 20                      # conservative: v7x per-TC VMEM
    return cap - max(12 << 20, cap // 8)    # ~52 MiB on v7x, ~112 MiB on v5e/v6e


def residual_block(x, params, *, force_tile=None):
    """x: [B, D_in].  params:
         w_scale: [D_in, D_out] or None (None iff D_in == D_out)
         w1: [D_in, D_out], gamma1/beta1: [1, D_out]
         w2: [D_out, D_out], gamma2/beta2: [1, D_out]
       Linear weights are stored pre-transposed ([in, out]); float32 or
       bfloat16 (MXU accumulation is always f32)."""
    B, d_in = x.shape
    w1 = params["w1"]
    d_out = w1.shape[1]
    has_scale = params["w_scale"] is not None
    wdt = w1.dtype
    wbytes = w1.dtype.itemsize
    xbytes = x.dtype.itemsize
    F32 = 4

    budget = _vmem_budget()

    def fused_residency():
        r = (B * d_in * xbytes + d_in * d_out * wbytes + d_out * d_out * wbytes
             + 4 * d_out * F32 + B * d_out * xbytes)
        if has_scale:
            r += d_in * d_out * wbytes
        return r + 3 * B * d_out * F32           # f32 working set (h1 / h2 / identity)

    def tiled_residency(tn):
        # constant-index blocks (single-buffered) + scratch + working set
        r = (B * d_in * xbytes + d_in * d_out * wbytes + 2 * d_out * F32
             + B * d_out * wbytes + 3 * B * tn * F32)
        # feature-tiled blocks (double-buffered)
        per_tile = d_out * tn * wbytes + 2 * tn * F32 + B * tn * xbytes
        if has_scale:
            per_tile += d_in * tn * wbytes
        return r + 2 * per_tile

    # Cost hint: one HBM pass over every operand + output, MXU flops.
    hbm_in = x.size * xbytes + sum(int(p.size) * p.dtype.itemsize
                                   for p in params.values() if p is not None)
    flops = 2 * B * d_in * d_out + 2 * B * d_out * d_out + 10 * B * d_out
    if has_scale:
        flops += 2 * B * d_in * d_out
    cost = pl.CostEstimate(flops=int(flops), transcendentals=int(2 * d_out),
                           bytes_accessed=int(hbm_in + B * d_out * xbytes))

    out_shape = jax.ShapeDtypeStruct((B, d_out), x.dtype)

    # ---- fast path: full residency, single invocation, no grid / scratch ----
    if force_tile is None and fused_residency() <= budget:
        vmem_limit = int(min(budget, max(32 << 20, int(1.25 * fused_residency()))))
        if has_scale:
            inputs = (x, params["w_scale"], w1, params["gamma1"], params["beta1"],
                      params["w2"], params["gamma2"], params["beta2"])
        else:
            inputs = (x, w1, params["gamma1"], params["beta1"],
                      params["w2"], params["gamma2"], params["beta2"])
        return pl.pallas_call(
            functools.partial(_rb_fused_kernel, has_scale=has_scale),
            out_shape=out_shape,
            compiler_params=pltpu.CompilerParams(vmem_limit_bytes=vmem_limit),
            cost_estimate=cost,
        )(*inputs)

    # ---- tiled path: grid over stage-2 (lane-dense) feature tiles ----
    if force_tile is not None:
        tn = int(force_tile)
    else:
        cands = [t for t in (2048, 1024, 512, 256, 128)
                 if t < d_out and d_out % t == 0]
        tn = d_out
        for t in cands:
            if tiled_residency(t) <= budget:
                tn = t
                break
        else:
            if cands:
                tn = cands[-1]
            # TODO(synk): stream w1 in column blocks (extra grid axis) when even
            # the smallest feature tile does not fit the VMEM budget.
    assert d_out % tn == 0, "feature tile must divide d_out"
    n_j = d_out // tn
    vmem_limit = int(min(budget, max(32 << 20, int(1.25 * tiled_residency(tn)))))

    def call_tiled(single_buffer_consts):
        const_mode = pl.Buffered(1) if single_buffer_consts else None

        def const(shape):      # resident block, fetched once
            return pl.BlockSpec(shape, lambda j: (0, 0), pipeline_mode=const_mode)

        def tiled(shape):      # per-feature-tile stream (default double buffer)
            return pl.BlockSpec(shape, lambda j: (0, j))

        inputs = [x]
        in_specs = [const((B, d_in))]
        if has_scale:
            inputs.append(params["w_scale"])
            in_specs.append(tiled((d_in, tn)))
        inputs += [w1, params["gamma1"], params["beta1"],
                   params["w2"], params["gamma2"], params["beta2"]]
        in_specs += [const((d_in, d_out)), const((1, d_out)), const((1, d_out)),
                     tiled((d_out, tn)), tiled((1, tn)), tiled((1, tn))]

        return pl.pallas_call(
            functools.partial(_rb_tiled_kernel, has_scale=has_scale, tn=tn),
            out_shape=out_shape,
            grid_spec=pltpu.PrefetchScalarGridSpec(
                num_scalar_prefetch=0,
                grid=(n_j,),
                in_specs=in_specs,
                out_specs=pl.BlockSpec((B, tn), lambda j: (0, j)),
                scratch_shapes=[pltpu.VMEM((B, d_out), wdt)]),  # h1 in w2's dtype
            compiler_params=pltpu.CompilerParams(
                # stage-1 scratch is carried across feature tiles, so this axis
                # cannot be megacore-sharded (see module TODO for v7x).
                dimension_semantics=("arbitrary",),
                vmem_limit_bytes=vmem_limit),
            cost_estimate=cost,
        )(*inputs)

    try:
        return call_tiled(True)
    except Exception:
        # TODO(synk): drop fallback once pl.Buffered(1) single-buffering of
        # constant-index blocks is guaranteed by every deployed jax version.
        return call_tiled(False)


def init_params(key, d_in, d_out, weight_dtype=jnp.bfloat16):
    """PyTorch-default init (Linear: U(-1/sqrt(fan_in), 1/sqrt(fan_in)), no bias;
    BN: gamma=1, beta=0).  Weights stored [in, out]; bf16 by default (halves the
    dominant HBM weight traffic; MXU still accumulates in f32)."""
    k_s, k_1, k_2 = jax.random.split(key, 3)
    lim_in = 1.0 / (d_in ** 0.5)
    lim_out = 1.0 / (d_out ** 0.5)
    u = lambda k, shape, lim: jax.random.uniform(
        k, shape, jnp.float32, -lim, lim).astype(weight_dtype)
    return {
        "w_scale": None if d_in == d_out else u(k_s, (d_in, d_out), lim_in),
        "w1": u(k_1, (d_in, d_out), lim_in),
        "gamma1": jnp.ones((1, d_out), jnp.float32),
        "beta1": jnp.zeros((1, d_out), jnp.float32),
        "w2": u(k_2, (d_out, d_out), lim_out),
        "gamma2": jnp.ones((1, d_out), jnp.float32),
        "beta2": jnp.zeros((1, d_out), jnp.float32),
    }


def _bn_ref(h, gamma, beta):
    mean = jnp.mean(h, axis=0, keepdims=True)
    var = jnp.var(h, axis=0, keepdims=True)            # biased, like PyTorch BN
    return (h - mean) * jax.lax.rsqrt(var + BN_EPS) * gamma + beta


def residual_block_ref(x, params):
    """Pure-JAX reference (mirrors the kernel's cast pattern for bf16 weights)."""
    wdt = params["w1"].dtype
    xc = x.astype(wdt)
    if params["w_scale"] is None:
        identity = x
    else:
        identity = jnp.dot(xc, params["w_scale"], preferred_element_type=jnp.float32)
    h = jnp.dot(xc, params["w1"], preferred_element_type=jnp.float32)
    h = jnp.maximum(_bn_ref(h, params["gamma1"], params["beta1"]), 0.0)
    h = jnp.dot(h.astype(wdt), params["w2"], preferred_element_type=jnp.float32)
    h = _bn_ref(h, params["gamma2"], params["beta2"]) + identity
    return jnp.maximum(h, 0.0)


if __name__ == "__main__":
    # Lane-dense shapes: feature dims multiples of 128, batch multiple of 8.
    B, D_IN, D_OUT = 16, 256, 384        # D_IN != D_OUT -> scale (projection) path
    key = jax.random.PRNGKey(0)
    kx, kp = jax.random.split(key)
    x = jax.random.normal(kx, (B, D_IN), jnp.float32)

    # 1) f32 weights, scale branch, fused (full-residency) path
    params = init_params(kp, D_IN, D_OUT, jnp.float32)
    ref = residual_block_ref(x, params)
    out = jax.block_until_ready(residual_block(x, params))
    assert out.shape == (B, D_OUT)
    assert jnp.allclose(out, ref, atol=1e-3, rtol=1e-3), "f32 fused scale mismatch"

    # 2) same problem forced through the feature-tiled grid path (3 tiles of 128)
    out_t = jax.block_until_ready(residual_block(x, params, force_tile=128))
    assert jnp.allclose(out_t, ref, atol=1e-3, rtol=1e-3), "f32 tiled scale mismatch"

    # 3) identity (no-scale) branch: D_in == D_out, fused and tiled
    x_sq = jax.random.normal(kx, (B, D_OUT), jnp.float32)
    params_sq = init_params(kp, D_OUT, D_OUT, jnp.float32)
    ref_sq = residual_block_ref(x_sq, params_sq)
    out_sq = jax.block_until_ready(residual_block(x_sq, params_sq))
    assert jnp.allclose(out_sq, ref_sq, atol=1e-3, rtol=1e-3), "no-scale fused mismatch"
    out_sq_t = jax.block_until_ready(residual_block(x_sq, params_sq, force_tile=128))
    assert jnp.allclose(out_sq_t, ref_sq, atol=1e-3, rtol=1e-3), "no-scale tiled mismatch"

    # 4) bfloat16 weights with f32 MXU accumulation
    params_bf = init_params(kp, D_IN, D_OUT, jnp.bfloat16)
    ref_bf = residual_block_ref(x, params_bf)
    out_bf = jax.block_until_ready(residual_block(x, params_bf))
    assert jnp.allclose(out_bf, ref_bf, atol=5e-2, rtol=5e-2), "bf16 fused mismatch"
    out_bf_t = jax.block_until_ready(residual_block(x, params_bf, force_tile=128))
    assert jnp.allclose(out_bf_t, ref_bf, atol=5e-2, rtol=5e-2), "bf16 tiled mismatch"

    print("KERNEL_OK")
</pallas_src>

<mosaic_0001>
module attributes {stable_mosaic.version = 11 : i64} {
  func.func @_rb_fused_kernel(%arg0: memref<16x256xf32, #tpu.memory_space<vmem>>, %arg1: memref<256x384xf32, #tpu.memory_space<vmem>>, %arg2: memref<256x384xf32, #tpu.memory_space<vmem>>, %arg3: memref<1x384xf32, #tpu.memory_space<vmem>>, %arg4: memref<1x384xf32, #tpu.memory_space<vmem>>, %arg5: memref<384x384xf32, #tpu.memory_space<vmem>>, %arg6: memref<1x384xf32, #tpu.memory_space<vmem>>, %arg7: memref<1x384xf32, #tpu.memory_space<vmem>>, %arg8: memref<16x384xf32, #tpu.memory_space<vmem>>) attributes {dimension_semantics = [], scalar_prefetch = 0 : i64, scratch_operands = 0 : i64, tpu.core_type = #tpu.core_type<tc>} {
    %c0 = arith.constant 0 : index
    %c0_0 = arith.constant 0 : index
    %0 = vector.load %arg0[%c0, %c0_0] : memref<16x256xf32, #tpu.memory_space<vmem>>, vector<16x256xf32>
    %c0_1 = arith.constant 0 : index
    %c0_2 = arith.constant 0 : index
    %1 = vector.load %arg2[%c0_1, %c0_2] : memref<256x384xf32, #tpu.memory_space<vmem>>, vector<256x384xf32>
    %cst = arith.constant dense<0.000000e+00> : vector<16x384xf32>
    %2 = tpu.matmul %0, %1, %cst {dimension_numbers = #tpu.dot_dimension_numbers<[1], [0], [0], [1], [0, 0, 1, 1], [], []>} : vector<16x256xf32>, vector<256x384xf32>, vector<16x384xf32> -> vector<16x384xf32>
    %c0_3 = arith.constant 0 : index
    %c0_4 = arith.constant 0 : index
    %3 = vector.load %arg3[%c0_3, %c0_4] : memref<1x384xf32, #tpu.memory_space<vmem>>, vector<1x384xf32>
    %c0_5 = arith.constant 0 : index
    %c0_6 = arith.constant 0 : index
    %4 = vector.load %arg4[%c0_5, %c0_6] : memref<1x384xf32, #tpu.memory_space<vmem>>, vector<1x384xf32>
    %cst_7 = arith.constant dense<0.000000e+00> : vector<384xf32>
    %5 = vector.multi_reduction <add>, %2, %cst_7 [0] : vector<16x384xf32> to vector<384xf32>
    %6 = vector.shape_cast %5 : vector<384xf32> to vector<1x384xf32>
    %cst_8 = arith.constant 1.600000e+01 : f32
    %7 = vector.broadcast %cst_8 : f32 to vector<1x384xf32>
    %8 = arith.divf %6, %7 : vector<1x384xf32>
    %9 = vector.broadcast %8 : vector<1x384xf32> to vector<16x384xf32>
    %10 = arith.subf %2, %9 : vector<16x384xf32>
    %11 = arith.mulf %10, %10 : vector<16x384xf32>
    %cst_9 = arith.constant dense<0.000000e+00> : vector<384xf32>
    %12 = vector.multi_reduction <add>, %11, %cst_9 [0] : vector<16x384xf32> to vector<384xf32>
    %13 = vector.shape_cast %12 : vector<384xf32> to vector<1x384xf32>
    %cst_10 = arith.constant 1.600000e+01 : f32
    %14 = vector.broadcast %cst_10 : f32 to vector<1x384xf32>
    %15 = arith.divf %13, %14 : vector<1x384xf32>
    %cst_11 = arith.constant 9.99999974E-6 : f32
    %16 = vector.broadcast %cst_11 : f32 to vector<1x384xf32>
    %17 = arith.addf %15, %16 : vector<1x384xf32>
    %18 = math.rsqrt %17 : vector<1x384xf32>
    %19 = arith.mulf %3, %18 : vector<1x384xf32>
    %20 = vector.broadcast %19 : vector<1x384xf32> to vector<16x384xf32>
    %21 = arith.mulf %10, %20 : vector<16x384xf32>
    %22 = vector.broadcast %4 : vector<1x384xf32> to vector<16x384xf32>
    %23 = arith.addf %21, %22 : vector<16x384xf32>
    %cst_12 = arith.constant 0.000000e+00 : f32
    %24 = vector.broadcast %cst_12 : f32 to vector<16x384xf32>
    %25 = arith.maximumf %23, %24 : vector<16x384xf32>
    %c0_13 = arith.constant 0 : index
    %c0_14 = arith.constant 0 : index
    %26 = vector.load %arg5[%c0_13, %c0_14] : memref<384x384xf32, #tpu.memory_space<vmem>>, vector<384x384xf32>
    %cst_15 = arith.constant dense<0.000000e+00> : vector<16x384xf32>
    %27 = tpu.matmul %25, %26, %cst_15 {dimension_numbers = #tpu.dot_dimension_numbers<[1], [0], [0], [1], [0, 0, 1, 1], [], []>} : vector<16x384xf32>, vector<384x384xf32>, vector<16x384xf32> -> vector<16x384xf32>
    %c0_16 = arith.constant 0 : index
    %c0_17 = arith.constant 0 : index
    %28 = vector.load %arg6[%c0_16, %c0_17] : memref<1x384xf32, #tpu.memory_space<vmem>>, vector<1x384xf32>
    %c0_18 = arith.constant 0 : index
    %c0_19 = arith.constant 0 : index
    %29 = vector.load %arg7[%c0_18, %c0_19] : memref<1x384xf32, #tpu.memory_space<vmem>>, vector<1x384xf32>
    %cst_20 = arith.constant dense<0.000000e+00> : vector<384xf32>
    %30 = vector.multi_reduction <add>, %27, %cst_20 [0] : vector<16x384xf32> to vector<384xf32>
    %31 = vector.shape_cast %30 : vector<384xf32> to vector<1x384xf32>
    %cst_21 = arith.constant 1.600000e+01 : f32
    %32 = vector.broadcast %cst_21 : f32 to vector<1x384xf32>
    %33 = arith.divf %31, %32 : vector<1x384xf32>
    %34 = vector.broadcast %33 : vector<1x384xf32> to vector<16x384xf32>
    %35 = arith.subf %27, %34 : vector<16x384xf32>
    %36 = arith.mulf %35, %35 : vector<16x384xf32>
    %cst_22 = arith.constant dense<0.000000e+00> : vector<384xf32>
    %37 = vector.multi_reduction <add>, %36, %cst_22 [0] : vector<16x384xf32> to vector<384xf32>
    %38 = vector.shape_cast %37 : vector<384xf32> to vector<1x384xf32>
    %cst_23 = arith.constant 1.600000e+01 : f32
    %39 = vector.broadcast %cst_23 : f32 to vector<1x384xf32>
    %40 = arith.divf %38, %39 : vector<1x384xf32>
    %cst_24 = arith.constant 9.99999974E-6 : f32
    %41 = vector.broadcast %cst_24 : f32 to vector<1x384xf32>
    %42 = arith.addf %40, %41 : vector<1x384xf32>
    %43 = math.rsqrt %42 : vector<1x384xf32>
    %44 = arith.mulf %28, %43 : vector<1x384xf32>
    %45 = vector.broadcast %44 : vector<1x384xf32> to vector<16x384xf32>
    %46 = arith.mulf %35, %45 : vector<16x384xf32>
    %47 = vector.broadcast %29 : vector<1x384xf32> to vector<16x384xf32>
    %48 = arith.addf %46, %47 : vector<16x384xf32>
    %c0_25 = arith.constant 0 : index
    %c0_26 = arith.constant 0 : index
    %49 = vector.load %arg1[%c0_25, %c0_26] : memref<256x384xf32, #tpu.memory_space<vmem>>, vector<256x384xf32>
    %cst_27 = arith.constant dense<0.000000e+00> : vector<16x384xf32>
    %50 = tpu.matmul %0, %49, %cst_27 {dimension_numbers = #tpu.dot_dimension_numbers<[1], [0], [0], [1], [0, 0, 1, 1], [], []>} : vector<16x256xf32>, vector<256x384xf32>, vector<16x384xf32> -> vector<16x384xf32>
    %51 = arith.addf %48, %50 : vector<16x384xf32>
    %cst_28 = arith.constant 0.000000e+00 : f32
    %52 = vector.broadcast %cst_28 : f32 to vector<16x384xf32>
    %53 = arith.maximumf %51, %52 : vector<16x384xf32>
    %c0_29 = arith.constant 0 : index
    %c0_30 = arith.constant 0 : index
    %54 = vector.load %arg8[%c0_29, %c0_30] : memref<16x384xf32, #tpu.memory_space<vmem>>, vector<16x384xf32>
    tpu.vector_store %arg8[%c0_29, %c0_30], %53 {strides = array<i32>} : memref<16x384xf32, #tpu.memory_space<vmem>>, vector<16x384xf32>,
    return
  }
}

</mosaic_0001>

<bundles_post_ra>
// kernel: tpu_custom_call.1
= control target key start
LH: loop header
LB: loop body
LE: loop exit
PB: predicated region body
PF: predicated region fallthrough
CT: control target
= control target key end

     0   :  { %13 = vsyncpa [#allocation3], 0  ;;  %s1862_s0 = inlined_call_operand.hbm [shape: f32[16,256], index: 0, kind: input, shape index: {}]   ;;  %s1863_s1 = inlined_call_operand.hbm [shape: f32[256,384], index: 1, kind: input, shape index: {}]   ;;  %s1864_s2 = inlined_call_operand.hbm [shape: f32[256,384], index: 2, kind: input, shape index: {}]   ;;  %s1865_s3 = inlined_call_operand.vmem [shape: f32[1,384], index: 3, kind: input, shape index: {}]   ;;  %s1866_s4 = inlined_call_operand.vmem [shape: f32[1,384], index: 4, kind: input, shape index: {}]   ;;  %s1867_s5 = inlined_call_operand.hbm [shape: f32[384,384], index: 5, kind: input, shape index: {}]   ;;  %s1868_s6 = inlined_call_operand.vmem [shape: f32[1,384], index: 6, kind: input, shape index: {}]   ;;  %s1869_s7 = inlined_call_operand.vmem [shape: f32[1,384], index: 7, kind: input, shape index: {}]   ;;  %s1870_s8 = inlined_call_operand.hbm [shape: f32[16,384], index: 8, kind: output, shape index: {}]  }
   0x1   :  { %14 = vsyncpa [#allocation6], 0 }
   0x2   :  { %15 = vsyncpa [#allocation9], 0 }
   0x3   :  { %16 = vsyncpa [#allocation4], 0  ;;  %s1659_s27 = smov [#allocation5]  }
   0x4   :  { %s34_s28 = sshll.u32 %s1659_s27, 4  ;;  %s35_s28 = int_to_ptr.vmem [resolvable:$true] %s34_s28 }
   0x5   :  { %s1559_s29 = scalar_lea.vmem %s35_s28, 12288  ;;  %p1564_p1 = scmp.lt.s32.totalorder %s35_s28, %s35_s28 }
   0x6   :  { %p1560_p0 = scmp.ne.s32.totalorder %s35_s28, %s1559_s29  ;;  %p1565_p2 = scmp.lt.s32.totalorder %s1559_s29, %s1559_s29 }
   0x8   :  { %p1566_p3 = por %p1565_p2, %p1564_p1 }
   0xa   :  { %p1567_p4 = pnand %p1566_p3, %p1560_p0 }
   0xc   :  { %1570 = shalt.err (!%p1567_p4)
}
   0xd   :  { %s1660_s30 = smov 384   ;;  %s1661_s9 = smov 24  }
   0xe   :  { %40 = dma.hbm_to_vmem [thread:$0]  %s1863_s1, 12288, %s35_s28, [#allocation6], %s1660_s30, %s1660_s30, %s1661_s9  }
   0xf   :  { %s1662_s12 = smov [#allocation2]  }
  0x10   :  { %s22_s13 = sshll.u32 %s1662_s12, 4  ;;  %s23_s13 = int_to_ptr.vmem [resolvable:$true] %s22_s13 }
  0x11   :  { %s1579_s14 = scalar_lea.vmem %s23_s13, 512  ;;  %p1584_p6 = scmp.lt.s32.totalorder %s23_s13, %s23_s13 }
  0x12   :  { %p1580_p5 = scmp.ne.s32.totalorder %s23_s13, %s1579_s14  ;;  %p1585_p7 = scmp.lt.s32.totalorder %s1579_s14, %s1579_s14 }
  0x14   :  { %p1586_p8 = por %p1585_p7, %p1584_p6 }
  0x16   :  { %p1587_p9 = pnand %p1586_p8, %p1580_p5 }
  0x18   :  { %1590 = shalt.err (!%p1587_p9)
}
  0x19   :  { %s1663_s15 = smov 256   ;;  %s1664_s16 = smov 16  }
  0x1a   :  { %28 = dma.hbm_to_vmem [thread:$0]  %s1862_s0, 512, %s23_s13, [#allocation3], %s1663_s15, %s1663_s15, %s1664_s16  }
  0x1b   :  { %s1665_s19 = smov [#allocation7]   ;;  %s1666_s21 = smov [#allocation8]  }
  0x1c   :  { %s46_s20 = sshll.u32 %s1665_s19, 4  ;;  %s62_s1 = sshll.u32 %s1666_s21, 4  ;;  %s47_s20 = int_to_ptr.vmem [resolvable:$true] %s46_s20  ;;  %s63_s1 = int_to_ptr.vmem [resolvable:$true] %s62_s1 }
  0x1d   :  { %s1599_s22 = scalar_lea.vmem %s47_s20, 12288  ;;  %p1604_p11 = scmp.lt.s32.totalorder %s47_s20, %s47_s20 }
  0x1e   :  { %p1600_p10 = scmp.ne.s32.totalorder %s47_s20, %s1599_s22  ;;  %p1605_p12 = scmp.lt.s32.totalorder %s1599_s22, %s1599_s22 }
  0x20   :  { %p1606_p13 = por %p1605_p12, %p1604_p11 }
  0x22   :  { %p1607_p0 = pnand %p1606_p13, %p1600_p10 }
  0x24   :  { %1610 = shalt.err (!%p1607_p0)
}
  0x25   :  { %52 = dma.hbm_to_vmem [thread:$0]  %s1864_s2, 12288, %s47_s20, [#allocation6], %s1660_s30, %s1660_s30, %s1661_s9  }
  0x26   :  { %s1619_s0 = scalar_lea.vmem %s63_s1, 18432  ;;  %p1624_p2 = scmp.lt.s32.totalorder %s63_s1, %s63_s1 }
  0x27   :  { %p1620_p1 = scmp.ne.s32.totalorder %s63_s1, %s1619_s0  ;;  %p1625_p3 = scmp.lt.s32.totalorder %s1619_s0, %s1619_s0 }
  0x29   :  { %p1626_p4 = por %p1625_p3, %p1624_p2 }
  0x2b   :  { %p1627_p5 = pnand %p1626_p4, %p1620_p1 }
  0x2d   :  { %1630 = shalt.err (!%p1627_p5)
}
  0x2e   :  { %68 = dma.hbm_to_vmem [thread:$0]  %s1867_s5, 18432, %s63_s1, [#allocation9], %s1660_s30, %s1660_s30, %s1661_s9  }
  0x2f   :  { %1651 = dma.done.wait [#allocation3], 512  }
  0x30   :  { %1652 = vsyncadd [#allocation3], 4294966784 }
  0x31   :  { %1653 = dma.done.wait [#allocation6], 24576  }
  0x32   :  { %1654 = vsyncadd [#allocation6], 4294942720 }
  0x33   :  { %1655 = dma.done.wait [#allocation9], 18432  }
  0x34   :  { %1656 = vsyncadd [#allocation9], 4294948864  ;;  %v135_v0 = vld [vmem:[#allocation7 + $0x170] sm:$0xff]  ;;  %v134_v1 = vld [vmem:[#allocation7 + $0x168] sm:$0xff] }
  0x35   :  { %v132_v2 = vld [vmem:[#allocation7 + $0x158] sm:$0xff]  ;;  %185 = vmatprep.subr.mxu0 %v135_v0  ;;  %v131_v3 = vld [vmem:[#allocation7 + $0x150] sm:$0xff]  ;;  %v129_v5 = vld [vmem:[#allocation7 + $0x140] sm:$0xff] }
  0x36   :  { %v184_v4 = vld [vmem:[#allocation7 + $0x2f8] sm:$0xff]  ;;  %186 = vmatpush1.msra.mxu0 %v134_v1  ;;  %v181_v8 = vld [vmem:[#allocation7 + $0x2e0] sm:$0xff]  ;;  %v126_v10 = vld [vmem:[#allocation7 + $0x128] sm:$0xff] }
  0x37   :  { %1357 = vmatprep.subr.mxu1 %v184_v4  ;;  %v136_v6 = vld [vmem:[#allocation7 + $0x178] sm:$0xff]  ;;  %187 = vmatprep.subr.mxu0 %v132_v2  ;;  %v133_v9 = vld [vmem:[#allocation7 + $0x160] sm:$0xff]  ;;  %v178_v11 = vld [vmem:[#allocation7 + $0x2c8] sm:$0xff] }
  0x38   :  { %v128_v7 = vld [vmem:[#allocation7 + $0x138] sm:$0xff]  ;;  %1358 = vmatpush3.msra.mxu1 %v136_v6  ;;  %188 = vmatpush1.msra.mxu0 %v131_v3  ;;  %v125_v12 = vld [vmem:[#allocation7 + $0x120] sm:$0xff]  ;;  %v130_v13 = vld [vmem:[#allocation7 + $0x148] sm:$0xff] }
  0x39   :  { %1359 = vmatprep.subr.mxu1 %v181_v8  ;;  %189 = vmatprep.subr.mxu0 %v129_v5  ;;  %v175_v14 = vld [vmem:[#allocation7 + $0x2b0] sm:$0xff]  ;;  %v122_v17 = vld [vmem:[#allocation7 + $0x108] sm:$0xff]  ;;  %v172_v18 = vld [vmem:[#allocation7 + $0x298] sm:$0xff] }
  0x3a   :  { %1360 = vmatpush3.msra.mxu1 %v133_v9  ;;  %190 = vmatpush1.msra.mxu0 %v128_v7  ;;  %v123_v15 = vld [vmem:[#allocation7 + $0x110] sm:$0xff]  ;;  %v120_v19 = vld [vmem:[#allocation7 + $0xf8] sm:$0xff]  ;;  %v169_v22 = vld [vmem:[#allocation7 + $0x280] sm:$0xff] }
  0x3b   :  { %1361 = vmatprep.subr.mxu1 %v178_v11  ;;  %v127_v16 = vld [vmem:[#allocation7 + $0x130] sm:$0xff]  ;;  %191 = vmatprep.subr.mxu0 %v126_v10  ;;  %v124_v20 = vld [vmem:[#allocation7 + $0x118] sm:$0xff]  ;;  %v117_v23 = vld [vmem:[#allocation7 + $0xe0] sm:$0xff] }
  0x3c   :  { %1362 = vmatpush3.msra.mxu1 %v130_v13  ;;  %192 = vmatpush1.msra.mxu0 %v125_v12  ;;  %v119_v21 = vld [vmem:[#allocation7 + $0xf0] sm:$0xff]  ;;  %v121_v24 = vld [vmem:[#allocation7 + $0x100] sm:$0xff]  ;;  %v116_v25 = vld [vmem:[#allocation7 + $0xd8] sm:$0xff] }
  0x3d   :  { %1363 = vmatprep.subr.mxu1 %v175_v14  ;;  %193 = vmatprep.subr.mxu0 %v123_v15  ;;  %v166_v26 = vld [vmem:[#allocation7 + $0x268] sm:$0xff]  ;;  %v113_v29 = vld [vmem:[#allocation7 + $0xc0] sm:$0xff]  ;;  %v163_v30 = vld [vmem:[#allocation7 + $0x250] sm:$0xff] }
  0x3e   :  { %1364 = vmatpush3.msra.mxu1 %v127_v16  ;;  %194 = vmatpush1.msra.mxu0 %v122_v17  ;;  %v114_v27 = vld [vmem:[#allocation7 + $0xc8] sm:$0xff]  ;;  %v111_v31 = vld [vmem:[#allocation7 + $0xb0] sm:$0xff]  ;;  %v160_v34 = vld [vmem:[#allocation7 + $0x238] sm:$0xff] }
  0x3f   :  { %1365 = vmatprep.subr.mxu1 %v172_v18  ;;  %195 = vmatprep.subr.mxu0 %v120_v19  ;;  %v118_v28 = vld [vmem:[#allocation7 + $0xe8] sm:$0xff]  ;;  %v115_v32 = vld [vmem:[#allocation7 + $0xd0] sm:$0xff]  ;;  %v108_v35 = vld [vmem:[#allocation7 + $0x98] sm:$0xff] }
  0x40   :  { %1366 = vmatpush3.msra.mxu1 %v124_v20  ;;  %196 = vmatpush1.msra.mxu0 %v119_v21  ;;  %v110_v33 = vld [vmem:[#allocation7 + $0xa8] sm:$0xff]  ;;  %v112_v36 = vld [vmem:[#allocation7 + $0xb8] sm:$0xff]  ;;  %v107_v37 = vld [vmem:[#allocation7 + $0x90] sm:$0xff] }
  0x41   :  { %1367 = vmatprep.subr.mxu1 %v169_v22  ;;  %197 = vmatprep.subr.mxu0 %v117_v23  ;;  %v157_v38 = vld [vmem:[#allocation7 + $0x220] sm:$0xff]  ;;  %v104_v41 = vld [vmem:[#allocation7 + $0x78] sm:$0xff]  ;;  %v154_v42 = vld [vmem:[#allocation7 + $0x208] sm:$0xff] }
  0x42   :  { %1368 = vmatpush3.msra.mxu1 %v121_v24  ;;  %198 = vmatpush1.msra.mxu0 %v116_v25  ;;  %v105_v39 = vld [vmem:[#allocation7 + $0x80] sm:$0xff]  ;;  %v102_v43 = vld [vmem:[#allocation7 + $0x68] sm:$0xff]  ;;  %v151_v46 = vld [vmem:[#allocation7 + $0x1f0] sm:$0xff] }
  0x43   :  { %1369 = vmatprep.subr.mxu1 %v166_v26  ;;  %199 = vmatprep.subr.mxu0 %v114_v27  ;;  %v109_v40 = vld [vmem:[#allocation7 + $0xa0] sm:$0xff]  ;;  %v106_v44 = vld [vmem:[#allocation7 + $0x88] sm:$0xff]  ;;  %v99_v47 = vld [vmem:[#allocation7 + $0x50] sm:$0xff] }
  0x44   :  { %1370 = vmatpush3.msra.mxu1 %v118_v28  ;;  %200 = vmatpush1.msra.mxu0 %v113_v29  ;;  %v101_v45 = vld [vmem:[#allocation7 + $0x60] sm:$0xff]  ;;  %v103_v48 = vld [vmem:[#allocation7 + $0x70] sm:$0xff]  ;;  %v98_v49 = vld [vmem:[#allocation7 + $0x48] sm:$0xff] }
  0x45   :  { %1371 = vmatprep.subr.mxu1 %v163_v30  ;;  %201 = vmatprep.subr.mxu0 %v111_v31  ;;  %v148_v50 = vld [vmem:[#allocation7 + $0x1d8] sm:$0xff]  ;;  %v95_v53 = vld [vmem:[#allocation7 + $0x30] sm:$0xff]  ;;  %v145_v54 = vld [vmem:[#allocation7 + $0x1c0] sm:$0xff] }
  0x46   :  { %1372 = vmatpush3.msra.mxu1 %v115_v32  ;;  %202 = vmatpush1.msra.mxu0 %v110_v33  ;;  %v96_v51 = vld [vmem:[#allocation7 + $0x38] sm:$0xff]  ;;  %v93_v55 = vld [vmem:[#allocation7 + $0x20] sm:$0xff]  ;;  %v142_v58 = vld [vmem:[#allocation7 + $0x1a8] sm:$0xff] }
  0x47   :  { %1373 = vmatprep.subr.mxu1 %v160_v34  ;;  %203 = vmatprep.subr.mxu0 %v108_v35  ;;  %v100_v52 = vld [vmem:[#allocation7 + $0x58] sm:$0xff]  ;;  %v97_v56 = vld [vmem:[#allocation7 + $0x40] sm:$0xff]  ;;  %v90_v59 = vld [vmem:[#allocation7 + $0x8] sm:$0xff] }
  0x48   :  { %1374 = vmatpush3.msra.mxu1 %v112_v36  ;;  %204 = vmatpush1.msra.mxu0 %v107_v37  ;;  %v92_v57 = vld [vmem:[#allocation7 + $0x18] sm:$0xff]  ;;  %v94_v60 = vld [vmem:[#allocation7 + $0x28] sm:$0xff]  ;;  %v89_v61 = vld [vmem:[#allocation7] sm:$0xff] }
  0x49   :  { %1375 = vmatprep.subr.mxu1 %v157_v38  ;;  %205 = vmatprep.subr.mxu0 %v105_v39  ;;  %v139_v62 = vld [vmem:[#allocation7 + $0x190] sm:$0xff]  ;;  %v182_v1 = vld [vmem:[#allocation7 + $0x2e8] sm:$0xff]  ;;  %v180_v3 = vld [vmem:[#allocation7 + $0x2d8] sm:$0xff] }
  0x4a   :  { %1376 = vmatpush3.msra.mxu1 %v109_v40  ;;  %206 = vmatpush1.msra.mxu0 %v104_v41  ;;  %v183_v63 = vld [vmem:[#allocation7 + $0x2f0] sm:$0xff]  ;;  %v86_v2 = vld [vmem:[#allocation2 + $0x8] sm:$0xff]  ;;  %v1736_v4 = vld [vmem:[#allocation2] sm:$0xff] }
  0x4b   :  { %1377 = vmatprep.subr.mxu1 %v154_v42  ;;  %207 = vmatprep.subr.mxu0 %v102_v43  ;;  %v91_v0 = vld [vmem:[#allocation7 + $0x10] sm:$0xff]  ;;  %v1738_v6 = vld [vmem:[#allocation2 + $0x18] sm:$0xff]  ;;  %v177_v7 = vld [vmem:[#allocation7 + $0x2c0] sm:$0xff] }
  0x4c   :  { %1378 = vmatpush3.msra.mxu1 %v106_v44  ;;  %208 = vmatpush1.msra.mxu0 %v101_v45  ;;  %v179_v5 = vld [vmem:[#allocation7 + $0x2d0] sm:$0xff]  ;;  %v176_v8 = vld [vmem:[#allocation7 + $0x2b8] sm:$0xff]  ;;  %v174_v9 = vld [vmem:[#allocation7 + $0x2a8] sm:$0xff] }
  0x4d   :  { %1379 = vmatprep.subr.mxu1 %v151_v46  ;;  %209 = vmatprep.subr.mxu0 %v99_v47  ;;  %v87_v10 = vld [vmem:[#allocation2 + $0x10] sm:$0xff]  ;;  %v173_v11 = vld [vmem:[#allocation7 + $0x2a0] sm:$0xff]  ;;  %v170_v13 = vld [vmem:[#allocation7 + $0x288] sm:$0xff] }
  0x4e   :  { %1380 = vmatpush3.msra.mxu1 %v103_v48  ;;  %210 = vmatpush1.msra.mxu0 %v98_v49  ;;  %v171_v12 = vld [vmem:[#allocation7 + $0x290] sm:$0xff]  ;;  %v168_v14 = vld [vmem:[#allocation7 + $0x278] sm:$0xff]  ;;  %v165_v16 = vld [vmem:[#allocation7 + $0x260] sm:$0xff] }
  0x4f   :  { %1381 = vmatprep.subr.mxu1 %v148_v50  ;;  %211 = vmatprep.subr.mxu0 %v96_v51  ;;  %v167_v15 = vld [vmem:[#allocation7 + $0x270] sm:$0xff]  ;;  %v164_v17 = vld [vmem:[#allocation7 + $0x258] sm:$0xff]  ;;  %v162_v18 = vld [vmem:[#allocation7 + $0x248] sm:$0xff] }
  0x50   :  { %1382 = vmatpush3.msra.mxu1 %v100_v52  ;;  %212 = vmatpush1.msra.mxu0 %v95_v53  ;;  %v161_v19 = vld [vmem:[#allocation7 + $0x240] sm:$0xff]  ;;  %v159_v20 = vld [vmem:[#allocation7 + $0x230] sm:$0xff]  ;;  %v158_v21 = vld [vmem:[#allocation7 + $0x228] sm:$0xff] }
  0x51   :  { %1383 = vmatprep.subr.mxu1 %v145_v54  ;;  %213 = vmatprep.subr.mxu0 %v93_v55  ;;  %v156_v22 = vld [vmem:[#allocation7 + $0x218] sm:$0xff]  ;;  %v155_v23 = vld [vmem:[#allocation7 + $0x210] sm:$0xff]  ;;  %v153_v24 = vld [vmem:[#allocation7 + $0x200] sm:$0xff] }
  0x52   :  { %1384 = vmatpush3.msra.mxu1 %v97_v56  ;;  %214 = vmatpush1.msra.mxu0 %v92_v57  ;;  %v152_v25 = vld [vmem:[#allocation7 + $0x1f8] sm:$0xff]  ;;  %v150_v26 = vld [vmem:[#allocation7 + $0x1e8] sm:$0xff]  ;;  %v149_v27 = vld [vmem:[#allocation7 + $0x1e0] sm:$0xff] }
  0x53   :  { %1385 = vmatprep.subr.mxu1 %v142_v58  ;;  %215 = vmatprep.subr.mxu0 %v90_v59  ;;  %v147_v28 = vld [vmem:[#allocation7 + $0x1d0] sm:$0xff]  ;;  %v146_v29 = vld [vmem:[#allocation7 + $0x1c8] sm:$0xff]  ;;  %v144_v30 = vld [vmem:[#allocation7 + $0x1b8] sm:$0xff] }
  0x54   :  { %1386 = vmatpush3.msra.mxu1 %v94_v60  ;;  %216 = vmatpush1.msra.mxu0 %v89_v61  ;;  %v143_v31 = vld [vmem:[#allocation7 + $0x1b0] sm:$0xff]  ;;  %v141_v32 = vld [vmem:[#allocation7 + $0x1a0] sm:$0xff]  ;;  %v140_v33 = vld [vmem:[#allocation7 + $0x198] sm:$0xff] }
  0x55   :  { %1387 = vmatprep.subr.mxu1 %v139_v62  ;;  %217 = vmatprep.subr.mxu0 %v183_v63  ;;  %v138_v34 = vld [vmem:[#allocation7 + $0x188] sm:$0xff]  ;;  %v137_v35 = vld [vmem:[#allocation7 + $0x180] sm:$0xff]  ;;  %v530_v36 = vld [vmem:[#allocation8 + $0x170] sm:$0xff] }
  0x56   :  { %1388 = vmatpush3.msra.mxu1 %v91_v0  ;;  %218 = vmatpush2.msra.mxu0 %v182_v1  ;;  %v529_v37 = vld [vmem:[#allocation8 + $0x168] sm:$0xff]  ;;  %v527_v38 = vld [vmem:[#allocation8 + $0x158] sm:$0xff]  ;;  %v526_v39 = vld [vmem:[#allocation8 + $0x150] sm:$0xff] }
  0x57   :  { %326 = vmatprep.mubr.f32.mxu1 %v86_v2  ;;  %219 = vmatprep.subr.mxu0 %v180_v3  ;;  %v524_v40 = vld [vmem:[#allocation8 + $0x140] sm:$0xff]  ;;  %v523_v41 = vld [vmem:[#allocation8 + $0x138] sm:$0xff]  ;;  %v521_v42 = vld [vmem:[#allocation8 + $0x128] sm:$0xff] }
  0x58   :  { %327 = vmatmul.mubr.f32.vlgmr.msra.gmra.mxu1 %v1736_v4  ;;  %220 = vmatpush2.msra.mxu0 %v179_v5  ;;  %v520_v43 = vld [vmem:[#allocation8 + $0x120] sm:$0xff]  ;;  %v518_v44 = vld [vmem:[#allocation8 + $0x110] sm:$0xff]  ;;  %v517_v45 = vld [vmem:[#allocation8 + $0x108] sm:$0xff] }
  0x59   :  { %331 = vmatprep.mubr.f32.mxu1 %v1738_v6  ;;  %221 = vmatprep.subr.mxu0 %v177_v7  ;;  %v515_v46 = vld [vmem:[#allocation8 + $0xf8] sm:$0xff]  ;;  %v514_v47 = vld [vmem:[#allocation8 + $0xf0] sm:$0xff]  ;;  %v512_v48 = vld [vmem:[#allocation8 + $0xe0] sm:$0xff] }
  0x5a   :  { %249 = vmatprep.mubr.f32.mxu0 %v86_v2  ;;  %222 = vmatpush2.msra.mxu0 %v176_v8  ;;  %v511_v49 = vld [vmem:[#allocation8 + $0xd8] sm:$0xff]  ;;  %v509_v50 = vld [vmem:[#allocation8 + $0xc8] sm:$0xff]  ;;  %v508_v51 = vld [vmem:[#allocation8 + $0xc0] sm:$0xff] }
  0x5b   :  { %223 = vmatprep.subr.mxu0 %v174_v9  ;;  %628 = vmatprep.subr.mxu1 %v530_v36  ;;  %v506_v52 = vld [vmem:[#allocation8 + $0xb0] sm:$0xff]  ;;  %v505_v53 = vld [vmem:[#allocation8 + $0xa8] sm:$0xff]  ;;  %v503_v54 = vld [vmem:[#allocation8 + $0x98] sm:$0xff] }
  0x5c   :  { %332 = vmatmul.mubr.f32.gmra.mxu1 %v87_v10  ;;  %224 = vmatpush2.msra.mxu0 %v173_v11  ;;  %v502_v55 = vld [vmem:[#allocation8 + $0x90] sm:$0xff]  ;;  %v500_v56 = vld [vmem:[#allocation8 + $0x80] sm:$0xff]  ;;  %v499_v57 = vld [vmem:[#allocation8 + $0x78] sm:$0xff] }
  0x5d   :  { %225 = vmatprep.subr.mxu0 %v171_v12  ;;  %629 = vmatpush1.msra.mxu1 %v529_v37  ;;  %v497_v58 = vld [vmem:[#allocation8 + $0x68] sm:$0xff]  ;;  %v496_v59 = vld [vmem:[#allocation8 + $0x60] sm:$0xff]  ;;  %v494_v60 = vld [vmem:[#allocation8 + $0x50] sm:$0xff] }
  0x5e   :  { %226 = vmatpush2.msra.mxu0 %v170_v13  ;;  %630 = vmatprep.subr.mxu1 %v527_v38  ;;  %v493_v61 = vld [vmem:[#allocation8 + $0x48] sm:$0xff]  ;;  %v491_v62 = vld [vmem:[#allocation8 + $0x38] sm:$0xff]  ;;  %v490_v63 = vld [vmem:[#allocation8 + $0x30] sm:$0xff] }
  0x5f   :  { %227 = vmatprep.subr.mxu0 %v168_v14  ;;  %631 = vmatpush1.msra.mxu1 %v526_v39  ;;  %v488_v0 = vld [vmem:[#allocation8 + $0x20] sm:$0xff]  ;;  %v487_v1 = vld [vmem:[#allocation8 + $0x18] sm:$0xff]  ;;  %v485_v2 = vld [vmem:[#allocation8 + $0x8] sm:$0xff] }
  0x60   :  { %228 = vmatpush2.msra.mxu0 %v167_v15  ;;  %632 = vmatprep.subr.mxu1 %v524_v40  ;;  %v484_v3 = vld [vmem:[#allocation8] sm:$0xff]  ;;  %v578_v5 = vld [vmem:[#allocation8 + $0x2f0] sm:$0xff]  ;;  %v577_v7 = vld [vmem:[#allocation8 + $0x2e8] sm:$0xff] }
  0x61   :  { %229 = vmatprep.subr.mxu0 %v165_v16  ;;  %633 = vmatpush1.msra.mxu1 %v523_v41  ;;  %v623_v8 = vld [vmem:[#allocation8 + $0x458] sm:$0xff]  ;;  %v574_v11 = vld [vmem:[#allocation8 + $0x2d0] sm:$0xff]  ;;  %v620_v12 = vld [vmem:[#allocation8 + $0x440] sm:$0xff] }
  0x62   :  { %230 = vmatpush2.msra.mxu0 %v164_v17  ;;  %634 = vmatprep.subr.mxu1 %v521_v42  ;;  %v575_v9 = vld [vmem:[#allocation8 + $0x2d8] sm:$0xff]  ;;  %v572_v13 = vld [vmem:[#allocation8 + $0x2c0] sm:$0xff]  ;;  %v617_v16 = vld [vmem:[#allocation8 + $0x428] sm:$0xff] }
  0x63   :  { %231 = vmatprep.subr.mxu0 %v162_v18  ;;  %635 = vmatpush1.msra.mxu1 %v520_v43  ;;  %v619_v14 = vld [vmem:[#allocation8 + $0x438] sm:$0xff]  ;;  %v569_v17 = vld [vmem:[#allocation8 + $0x2a8] sm:$0xff]  ;;  %v616_v18 = vld [vmem:[#allocation8 + $0x420] sm:$0xff] }
  0x64   :  { %232 = vmatpush2.msra.mxu0 %v161_v19  ;;  %636 = vmatprep.subr.mxu1 %v518_v44  ;;  %v571_v15 = vld [vmem:[#allocation8 + $0x2b8] sm:$0xff]  ;;  %v568_v19 = vld [vmem:[#allocation8 + $0x2a0] sm:$0xff]  ;;  %v602_v36 = vld [vmem:[#allocation8 + $0x3b0] sm:$0xff] }
  0x65   :  { %233 = vmatprep.subr.mxu0 %v159_v20  ;;  %637 = vmatpush1.msra.mxu1 %v517_v45  ;;  %v614_v20 = vld [vmem:[#allocation8 + $0x410] sm:$0xff]  ;;  %v601_v38 = vld [vmem:[#allocation8 + $0x3a8] sm:$0xff]  ;;  %v599_v40 = vld [vmem:[#allocation8 + $0x398] sm:$0xff] }
  0x66   :  { %234 = vmatpush2.msra.mxu0 %v158_v21  ;;  %638 = vmatprep.subr.mxu1 %v515_v46  ;;  %v566_v21 = vld [vmem:[#allocation8 + $0x290] sm:$0xff]  ;;  %v553_v39 = vld [vmem:[#allocation8 + $0x228] sm:$0xff]  ;;  %v551_v41 = vld [vmem:[#allocation8 + $0x218] sm:$0xff] }
  0x67   :  { %235 = vmatprep.subr.mxu0 %v156_v22  ;;  %639 = vmatpush1.msra.mxu1 %v514_v47  ;;  %v613_v22 = vld [vmem:[#allocation8 + $0x408] sm:$0xff]  ;;  %v554_v37 = vld [vmem:[#allocation8 + $0x230] sm:$0xff]  ;;  %v596_v44 = vld [vmem:[#allocation8 + $0x380] sm:$0xff] }
  0x68   :  { %236 = vmatpush2.msra.mxu0 %v155_v23  ;;  %640 = vmatprep.subr.mxu1 %v512_v48  ;;  %v565_v23 = vld [vmem:[#allocation8 + $0x288] sm:$0xff]  ;;  %v598_v42 = vld [vmem:[#allocation8 + $0x390] sm:$0xff]  ;;  %v548_v45 = vld [vmem:[#allocation8 + $0x200] sm:$0xff] }
  0x69   :  { %237 = vmatprep.subr.mxu0 %v153_v24  ;;  %641 = vmatpush1.msra.mxu1 %v511_v49  ;;  %v611_v24 = vld [vmem:[#allocation8 + $0x3f8] sm:$0xff]  ;;  %v550_v43 = vld [vmem:[#allocation8 + $0x210] sm:$0xff]  ;;  %v593_v48 = vld [vmem:[#allocation8 + $0x368] sm:$0xff] }
  0x6a   :  { %238 = vmatpush2.msra.mxu0 %v152_v25  ;;  %642 = vmatprep.subr.mxu1 %v509_v50  ;;  %v563_v25 = vld [vmem:[#allocation8 + $0x278] sm:$0xff]  ;;  %v545_v49 = vld [vmem:[#allocation8 + $0x1e8] sm:$0xff]  ;;  %v592_v50 = vld [vmem:[#allocation8 + $0x360] sm:$0xff] }
  0x6b   :  { %239 = vmatprep.subr.mxu0 %v150_v26  ;;  %643 = vmatpush1.msra.mxu1 %v508_v51  ;;  %v610_v26 = vld [vmem:[#allocation8 + $0x3f0] sm:$0xff]  ;;  %v595_v46 = vld [vmem:[#allocation8 + $0x378] sm:$0xff]  ;;  %v544_v51 = vld [vmem:[#allocation8 + $0x1e0] sm:$0xff] }
  0x6c   :  { %240 = vmatpush2.msra.mxu0 %v149_v27  ;;  %644 = vmatprep.subr.mxu1 %v506_v52  ;;  %v562_v27 = vld [vmem:[#allocation8 + $0x270] sm:$0xff]  ;;  %v547_v47 = vld [vmem:[#allocation8 + $0x1f8] sm:$0xff] }
  0x6d   :  { %241 = vmatprep.subr.mxu0 %v147_v28  ;;  %645 = vmatpush1.msra.mxu1 %v505_v53  ;;  %v608_v28 = vld [vmem:[#allocation8 + $0x3e0] sm:$0xff]  ;;  %v590_v52 = vld [vmem:[#allocation8 + $0x350] sm:$0xff] }
  0x6e   :  { %242 = vmatpush2.msra.mxu0 %v146_v29  ;;  %646 = vmatprep.subr.mxu1 %v503_v54  ;;  %v560_v29 = vld [vmem:[#allocation8 + $0x260] sm:$0xff]  ;;  %v542_v53 = vld [vmem:[#allocation8 + $0x1d0] sm:$0xff]  ;;  %v589_v54 = vld [vmem:[#allocation8 + $0x348] sm:$0xff] }
  0x6f   :  { %243 = vmatprep.subr.mxu0 %v144_v30  ;;  %647 = vmatpush1.msra.mxu1 %v502_v55  ;;  %v607_v30 = vld [vmem:[#allocation8 + $0x3d8] sm:$0xff]  ;;  %v541_v55 = vld [vmem:[#allocation8 + $0x1c8] sm:$0xff] }
  0x70   :  { %244 = vmatpush2.msra.mxu0 %v143_v31  ;;  %648 = vmatprep.subr.mxu1 %v500_v56  ;;  %v559_v31 = vld [vmem:[#allocation8 + $0x258] sm:$0xff] }
  0x71   :  { %245 = vmatprep.subr.mxu0 %v141_v32  ;;  %649 = vmatpush1.msra.mxu1 %v499_v57  ;;  %v605_v32 = vld [vmem:[#allocation8 + $0x3c8] sm:$0xff]  ;;  %v587_v56 = vld [vmem:[#allocation8 + $0x338] sm:$0xff] }
  0x72   :  { %246 = vmatpush2.msra.mxu0 %v140_v33  ;;  %650 = vmatprep.subr.mxu1 %v497_v58  ;;  %v557_v33 = vld [vmem:[#allocation8 + $0x248] sm:$0xff]  ;;  %v539_v57 = vld [vmem:[#allocation8 + $0x1b8] sm:$0xff]  ;;  %v586_v58 = vld [vmem:[#allocation8 + $0x330] sm:$0xff] }
  0x73   :  { %247 = vmatprep.subr.mxu0 %v138_v34  ;;  %651 = vmatpush1.msra.mxu1 %v496_v59  ;;  %v604_v34 = vld [vmem:[#allocation8 + $0x3c0] sm:$0xff]  ;;  %v538_v59 = vld [vmem:[#allocation8 + $0x1b0] sm:$0xff] }
  0x74   :  { %248 = vmatpush2.msra.mxu0 %v137_v35  ;;  %652 = vmatprep.subr.mxu1 %v494_v60  ;;  %v556_v35 = vld [vmem:[#allocation8 + $0x240] sm:$0xff] }
  0x75   :  { %250 = vmatmul.mubr.f32.vlgmr.msra.gmra.mxu0 %v1736_v4  ;;  %653 = vmatpush1.msra.mxu1 %v493_v61  ;;  %v626_v4 = vld [vmem:[#allocation8 + $0x470] sm:$0xff]  ;;  %v584_v60 = vld [vmem:[#allocation8 + $0x320] sm:$0xff] }
  0x76   :  { %255 = vmatprep.mubr.f32.mxu0 %v1738_v6  ;;  %654 = vmatprep.subr.mxu1 %v491_v62  ;;  %v625_v6 = vld [vmem:[#allocation8 + $0x468] sm:$0xff]  ;;  %v536_v61 = vld [vmem:[#allocation8 + $0x1a0] sm:$0xff]  ;;  %v583_v62 = vld [vmem:[#allocation8 + $0x318] sm:$0xff] }
  0x77   :  { %655 = vmatpush1.msra.mxu1 %v490_v63  ;;  %705 = vmatprep.subr.mxu0 %v626_v4  ;;  %v535_v63 = vld [vmem:[#allocation8 + $0x198] sm:$0xff] }
  0x78   :  { %656 = vmatprep.subr.mxu1 %v488_v0  ;;  %706 = vmatpush1.msra.mxu0 %v625_v6  ;;  %v581_v0 = vld [vmem:[#allocation8 + $0x308] sm:$0xff]  ;;  %v579_v4 = vld [vmem:[#allocation8 + $0x2f8] sm:$0xff] }
  0x79   :  { %256 = vmatmul.mubr.f32.gmra.mxu0 %v87_v10  ;;  %657 = vmatpush1.msra.mxu1 %v487_v1  ;;  %v622_v10 = vld [vmem:[#allocation8 + $0x450] sm:$0xff]  ;;  %v533_v1 = vld [vmem:[#allocation8 + $0x188] sm:$0xff]  ;;  %v1745_v6 = vld [vmem:[#allocation8 + $0x478] sm:$0xff] }
  0x7a   :  { %658 = vmatprep.subr.mxu1 %v485_v2  ;;  %707 = vmatprep.subr.mxu0 %v623_v8  ;;  %v580_v2 = vld [vmem:[#allocation8 + $0x300] sm:$0xff] }
  0x7b   :  { %659 = vmatpush1.msra.mxu1 %v484_v3  ;;  %708 = vmatpush1.msra.mxu0 %v622_v10  ;;  %v532_v3 = vld [vmem:[#allocation8 + $0x180] sm:$0xff] }
  0x7c   :  { %660 = vmatprep.subr.mxu1 %v578_v5  ;;  %709 = vmatprep.subr.mxu0 %v620_v12  ;;  %v1667_v5 = vmov 0.0  }
  0x7d   :  { %661 = vmatpush2.msra.mxu1 %v577_v7  ;;  %710 = vmatpush1.msra.mxu0 %v619_v14 }
  0x7e   :  { %662 = vmatprep.subr.mxu1 %v575_v9  ;;  %711 = vmatprep.subr.mxu0 %v617_v16 }
  0x7f   :  { %663 = vmatpush2.msra.mxu1 %v574_v11  ;;  %712 = vmatpush1.msra.mxu0 %v616_v18 }
  0x80   :  { %664 = vmatprep.subr.mxu1 %v572_v13  ;;  %713 = vmatprep.subr.mxu0 %v614_v20 }
  0x81   :  { %665 = vmatpush2.msra.mxu1 %v571_v15  ;;  %714 = vmatpush1.msra.mxu0 %v613_v22 }
  0x82   :  { %666 = vmatprep.subr.mxu1 %v569_v17  ;;  %715 = vmatprep.subr.mxu0 %v611_v24 }
  0x83   :  { %667 = vmatpush2.msra.mxu1 %v568_v19  ;;  %716 = vmatpush1.msra.mxu0 %v610_v26 }
  0x84   :  { %668 = vmatprep.subr.mxu1 %v566_v21  ;;  %717 = vmatprep.subr.mxu0 %v608_v28 }
  0x85   :  { %669 = vmatpush2.msra.mxu1 %v565_v23  ;;  %718 = vmatpush1.msra.mxu0 %v607_v30 }
  0x86   :  { %670 = vmatprep.subr.mxu1 %v563_v25  ;;  %719 = vmatprep.subr.mxu0 %v605_v32 }
  0x87   :  { %671 = vmatpush2.msra.mxu1 %v562_v27  ;;  %720 = vmatpush1.msra.mxu0 %v604_v34 }
  0x88   :  { %672 = vmatprep.subr.mxu1 %v560_v29  ;;  %721 = vmatprep.subr.mxu0 %v602_v36 }
  0x89   :  { %673 = vmatpush2.msra.mxu1 %v559_v31  ;;  %722 = vmatpush1.msra.mxu0 %v601_v38 }
  0x8a   :  { %674 = vmatprep.subr.mxu1 %v557_v33  ;;  %723 = vmatprep.subr.mxu0 %v599_v40 }
  0x8b   :  { %675 = vmatpush2.msra.mxu1 %v556_v35  ;;  %724 = vmatpush1.msra.mxu0 %v598_v42 }
  0x8c   :  { %676 = vmatprep.subr.mxu1 %v554_v37  ;;  %725 = vmatprep.subr.mxu0 %v596_v44 }
  0x8d   :  { %677 = vmatpush2.msra.mxu1 %v553_v39  ;;  %726 = vmatpush1.msra.mxu0 %v595_v46 }
  0x8e   :  { %678 = vmatprep.subr.mxu1 %v551_v41  ;;  %727 = vmatprep.subr.mxu0 %v593_v48 }
  0x8f   :  { %679 = vmatpush2.msra.mxu1 %v550_v43  ;;  %728 = vmatpush1.msra.mxu0 %v592_v50 }
  0x90   :  { %680 = vmatprep.subr.mxu1 %v548_v45  ;;  %729 = vmatprep.subr.mxu0 %v590_v52 }
  0x91   :  { %681 = vmatpush2.msra.mxu1 %v547_v47  ;;  %730 = vmatpush1.msra.mxu0 %v589_v54 }
  0x92   :  { %682 = vmatprep.subr.mxu1 %v545_v49  ;;  %731 = vmatprep.subr.mxu0 %v587_v56 }
  0x93   :  { %683 = vmatpush2.msra.mxu1 %v544_v51  ;;  %732 = vmatpush1.msra.mxu0 %v586_v58 }
  0x94   :  { %684 = vmatprep.subr.mxu1 %v542_v53  ;;  %733 = vmatprep.subr.mxu0 %v584_v60 }
  0x95   :  { %685 = vmatpush2.msra.mxu1 %v541_v55  ;;  %734 = vmatpush1.msra.mxu0 %v583_v62 }
  0x96   :  { %686 = vmatprep.subr.mxu1 %v539_v57  ;;  %735 = vmatprep.subr.mxu0 %v581_v0 }
  0x97   :  { %687 = vmatpush2.msra.mxu1 %v538_v59  ;;  %736 = vmatpush1.msra.mxu0 %v580_v2 }
  0x98   :  { %688 = vmatprep.subr.mxu1 %v536_v61  ;;  %769 = vmatprep.mubr.f32.mxu0 %v1667_v5 }
  0x99   :  { %689 = vmatpush2.msra.mxu1 %v535_v63  ;;  %1395 = vmatprep.subr.mxu0 %v579_v4 }
  0x9a   :  { %690 = vmatprep.subr.mxu1 %v533_v1 }
  0x9b   :  { %691 = vmatpush2.msra.mxu1 %v532_v3 }
  0x9c   :  { %1489 = vmatprep.subr.mxu1 %v1745_v6 }
 0x118   :  { %v1389_v7 = vpop.f32.mrf.mxu1 }
 0x11a   :  { %v1390_v8 = vpop.f32.mrf.mxu1 }
 0x11b   :  { %v1391_v10 = vadd.f32 %v1390_v8, %v1389_v7 }
 0x11c   :  { %v1392_v9 = vpop.f32.mrf.mxu1 }
 0x11e   :  { %v1393_v11 = vpop.f32.mrf.mxu1 }
 0x11f   :  { %v1394_v12 = vadd.f32 %v1393_v11, %v1392_v9 }
 0x121   :  { %v353_v13 = vadd.f32 %v1394_v12, %v1391_v10 }
 0x123   :  { %v354_v14 = vrot.slane %v353_v13, 4 }
 0x125   :  { %v355_v15 = vadd.f32 %v354_v14, %v353_v13 }
 0x127   :  { %v356_v16 = vrot.slane %v355_v15, 2 }
 0x129   :  { %v357_v17 = vadd.f32 %v356_v16, %v355_v15 }
 0x12b   :  { %v358_v18 = vrot.slane %v357_v17, 1 }
 0x12d   :  { %v359_v19 = vadd.f32 %v358_v18, %v357_v17  ;;  %v1668_v18 = vmov 1966171168  }
 0x12f   :  { %v363_v20 = vmul.f32 0.0625, %v359_v19  ;;  %v411_v19 = vunpack.c.l.s4 %v1668_v18  ;;  %v510_v18 = vld [vmem:[#allocation8 + $0xd0] sm:$0xff] }
 0x131   :  { %v1748_v21 = vsub.f32 %v1391_v10, %v363_v20  ;;  %v1750_v22 = vsub.f32 %v1394_v12, %v363_v20  ;;  %v413_v20 = vlaneseq }
 0x133   :  { %v372_v24 = vmul.f32 %v1748_v21, %v1748_v21  ;;  %v375_v25 = vmul.f32 %v1750_v22, %v1750_v22 }
 0x135   :  { %v251_v23 = vpop.f32.mrf.mxu0  ;;  %v390_v29 = vadd.f32 %v375_v25, %v372_v24  ;;  %v414_v24 = vshrl.u32 %v413_v20, 7  ;;  %v555_v20 = vld [vmem:[#allocation8 + $0x238] sm:$0xff] }
 0x137   :  { %v253_v26 = vpop.f32.mrf.mxu0  ;;  %v391_v35 = vrot.slane %v390_v29, 4 }
 0x139   :  { %v257_v27 = vpop.f32.mrf.mxu0  ;;  %v392_v40 = vadd.f32 %v391_v35, %v390_v29  ;;  %v1772_v35 = vsub.s32 0, %v414_v24 }
 0x13a   :  { %v339_v28 = vadd.f32 %v257_v27, %v251_v23 }
 0x13b   :  { %v259_v30 = vpop.f32.mrf.mxu0  ;;  %v393_v45 = vrot.slane %v392_v40, 2 }
 0x13c   :  { %v340_v31 = vrot.slane %v339_v28, 4  ;;  %v346_v32 = vadd.f32 %v259_v30, %v253_v26 }
 0x13d   :  { %v394_v51 = vadd.f32 %v393_v45, %v392_v40 }
 0x13e   :  { %v341_v33 = vadd.f32 %v340_v31, %v339_v28  ;;  %v347_v34 = vrot.slane %v346_v32, 4 }
 0x13f   :  { %v395_v59 = vrot.slane %v394_v51, 1 }
 0x140   :  { %v342_v36 = vrot.slane %v341_v33, 2  ;;  %v348_v37 = vadd.f32 %v347_v34, %v346_v32 }
 0x141   :  { %v396_v0 = vadd.f32 %v395_v59, %v394_v51 }
 0x142   :  { %v343_v38 = vadd.f32 %v342_v36, %v341_v33  ;;  %v349_v39 = vrot.slane %v348_v37, 2  ;;  %v337_v33 = vld [vmem:[%s1865_s3] sm:$0x7]  ;;  %v1774_v36 = vsub.s32 1, %v414_v24 }
 0x143   :  { %v399_v7 = vmul.f32 0.0625, %v396_v0 }
 0x144   :  { %v344_v41 = vrot.slane %v343_v38, 1  ;;  %v350_v42 = vadd.f32 %v349_v39, %v348_v37  ;;  %v1776_v37 = vsub.s32 2, %v414_v24 }
 0x145   :  { %v402_v12 = vadd.f32 1e-05, %v399_v7  ;;  %v570_v7 = vld [vmem:[#allocation8 + $0x2b0] sm:$0xff] }
 0x146   :  { %v345_v43 = vadd.f32 %v344_v41, %v343_v38  ;;  %v351_v44 = vrot.slane %v350_v42, 1  ;;  %v338_v38 = vld [vmem:[%s1866_s4] sm:$0x7] }
 0x147   :  { %1535 = vrsqrt.f32 %v402_v12  ;;  %v460_v40 = vrot.slane %v338_v38, %v1772_v35  ;;  %v464_v41 = vrot.slane %v338_v38, %v1774_v36  ;;  %v468_v45 = vrot.slane %v338_v38, %v1776_v37  ;;  %v516_v12 = vld [vmem:[#allocation8 + $0x100] sm:$0xff]  ;;  %v543_v38 = vld [vmem:[#allocation8 + $0x1d8] sm:$0xff] }
 0x148   :  { %v361_v46 = vmul.f32 0.0625, %v345_v43  ;;  %v352_v47 = vadd.f32 %v351_v44, %v350_v42 }
 0x14a   :  { %v1756_v48 = vsub.f32 %v251_v23, %v361_v46  ;;  %v1758_v49 = vsub.f32 %v257_v27, %v361_v46  ;;  %v362_v50 = vmul.f32 0.0625, %v352_v47  ;;  %v412_v23 = vunpack.c.0.s8 %v411_v19  ;;  %v606_v19 = vld [vmem:[#allocation8 + $0x3d0] sm:$0xff] }
 0x14c   :  { %v370_v52 = vmul.f32 %v1756_v48, %v1756_v48  ;;  %v373_v53 = vmul.f32 %v1758_v49, %v1758_v49  ;;  %v365_v54 = vsub.f32 %v253_v26, %v362_v50  ;;  %v368_v55 = vsub.f32 %v259_v30, %v362_v50 }
 0x14d   :  { %v1764_v27 = vsub.s32 %v412_v23, %v414_v24  ;;  %v507_v23 = vld [vmem:[#allocation8 + $0xb8] sm:$0xff] }
 0x14e   :  { %v376_v56 = vadd.f32 %v373_v53, %v370_v52  ;;  %v371_v57 = vmul.f32 %v365_v54, %v365_v54  ;;  %v374_v58 = vmul.f32 %v368_v55, %v368_v55  ;;  %v603_v24 = vld [vmem:[#allocation8 + $0x3b8] sm:$0xff] }
 0x150   :  { %v377_v60 = vrot.slane %v376_v56, 4  ;;  %v383_v61 = vadd.f32 %v374_v58, %v371_v57 }
 0x152   :  { %v378_v62 = vadd.f32 %v377_v60, %v376_v56  ;;  %v384_v63 = vrot.slane %v383_v61, 4 }
 0x154   :  { %v379_v1 = vrot.slane %v378_v62, 2  ;;  %v385_v2 = vadd.f32 %v384_v63, %v383_v61  ;;  %v1536_v25 = vpop.eup %1535  ;;  %v624_v63 = vld [vmem:[#allocation8 + $0x460] sm:$0xff] }
 0x155   :  { %v423_v31 = vrot.slane %v1536_v25, %v1764_v27  ;;  %v552_v25 = vld [vmem:[#allocation8 + $0x220] sm:$0xff] }
 0x156   :  { %v380_v3 = vadd.f32 %v379_v1, %v378_v62  ;;  %v386_v4 = vrot.slane %v385_v2, 2  ;;  %v531_v62 = vld [vmem:[#allocation8 + $0x178] sm:$0xff]  ;;  %v621_v1 = vld [vmem:[#allocation8 + $0x448] sm:$0xff] }
 0x158   :  { %v381_v8 = vrot.slane %v380_v3, 1  ;;  %v387_v9 = vadd.f32 %v386_v4, %v385_v2 }
 0x15a   :  { %v382_v10 = vadd.f32 %v381_v8, %v380_v3  ;;  %v388_v11 = vrot.slane %v387_v9, 1  ;;  %v525_v3 = vld [vmem:[#allocation8 + $0x148] sm:$0xff]  ;;  %v618_v8 = vld [vmem:[#allocation8 + $0x430] sm:$0xff] }
 0x15c   :  { %v397_v13 = vmul.f32 0.0625, %v382_v10  ;;  %v389_v14 = vadd.f32 %v388_v11, %v387_v9  ;;  %v519_v9 = vld [vmem:[#allocation8 + $0x118] sm:$0xff]  ;;  %v564_v11 = vld [vmem:[#allocation8 + $0x280] sm:$0xff] }
 0x15d   :  { %v615_v10 = vld [vmem:[#allocation8 + $0x418] sm:$0xff] }
 0x15e   :  { %v400_v15 = vadd.f32 1e-05, %v397_v13  ;;  %v398_v16 = vmul.f32 0.0625, %v389_v14  ;;  %v612_v13 = vld [vmem:[#allocation8 + $0x400] sm:$0xff]  ;;  %v561_v14 = vld [vmem:[#allocation8 + $0x268] sm:$0xff] }
 0x160   :  { %v401_v17 = vadd.f32 1e-05, %v398_v16  ;;  %1537 = vrsqrt.f32 %v400_v15  ;;  %v513_v15 = vld [vmem:[#allocation8 + $0xe8] sm:$0xff] }
 0x161   :  { %v609_v16 = vld [vmem:[#allocation8 + $0x3e8] sm:$0xff] }
 0x162   :  { %1539 = vrsqrt.f32 %v401_v17  ;;  %v558_v17 = vld [vmem:[#allocation8 + $0x250] sm:$0xff] }
 0x16d   :  { %v1538_v26 = vpop.eup %1537 }
 0x16f   :  { %v1540_v28 = vpop.eup %1539 }
 0x170   :  { %v409_v29 = vcombine.low %v1538_v26, %v1540_v28  ;;  %v504_v26 = vld [vmem:[#allocation8 + $0xa0] sm:$0xff] }
 0x171   :  { %v600_v28 = vld [vmem:[#allocation8 + $0x3a0] sm:$0xff] }
 0x172   :  { %v416_v30 = vrot.slane %v409_v29, %v1764_v27  ;;  %v549_v29 = vld [vmem:[#allocation8 + $0x208] sm:$0xff] }
 0x174   :  { %v424_v32 = vcombine.low %v416_v30, %v423_v31  ;;  %v501_v30 = vld [vmem:[#allocation8 + $0x88] sm:$0xff] }
 0x175   :  { %v597_v31 = vld [vmem:[#allocation8 + $0x388] sm:$0xff] }
 0x176   :  { %v431_v34 = vrot.slane %v424_v32, %v1764_v27  ;;  %v546_v32 = vld [vmem:[#allocation8 + $0x1f0] sm:$0xff] }
 0x178   :  { %v433_v39 = vmul.f32 %v431_v34, %v337_v33  ;;  %v498_v33 = vld [vmem:[#allocation8 + $0x70] sm:$0xff] }
 0x179   :  { %v594_v34 = vld [vmem:[#allocation8 + $0x370] sm:$0xff] }
 0x17a   :  { %v438_v42 = vrot.slane %v433_v39, %v1772_v35  ;;  %v442_v43 = vrot.slane %v433_v39, %v1774_v36  ;;  %v446_v44 = vrot.slane %v433_v39, %v1776_v37  ;;  %v495_v39 = vld [vmem:[#allocation8 + $0x58] sm:$0xff] }
 0x17c   :  { %v454_v46 = vmul.f32 %v442_v43, %v368_v55  ;;  %v451_v47 = vmul.f32 %v442_v43, %v365_v54  ;;  %v452_v50 = vmul.f32 %v446_v44, %v1748_v21  ;;  %v450_v51 = vmul.f32 %v438_v42, %v1756_v48  ;;  %v576_v54 = vld [vmem:[#allocation8 + $0x2e0] sm:$0xff] }
 0x17d   :  { %v455_v57 = vmul.f32 %v446_v44, %v1750_v22  ;;  %v453_v59 = vmul.f32 %v438_v42, %v1758_v49  ;;  %v528_v21 = vld [vmem:[#allocation8 + $0x160] sm:$0xff]  ;;  %v573_v49 = vld [vmem:[#allocation8 + $0x2c8] sm:$0xff] }
 0x17e   :  { %v473_v52 = vadd.f32 %v464_v41, %v451_v47  ;;  %v474_v53 = vadd.f32 %v468_v45, %v452_v50  ;;  %v1789_v56 = vadd.f32 %v460_v40, %v450_v51  ;;  %v1792_v58 = vadd.f32 %v464_v41, %v454_v46  ;;  %v540_v41 = vld [vmem:[#allocation8 + $0x1c0] sm:$0xff]  ;;  %v537_v44 = vld [vmem:[#allocation8 + $0x1a8] sm:$0xff]  ;;  %v534_v47 = vld [vmem:[#allocation8 + $0x190] sm:$0xff] }
 0x17f   :  { %v1796_v48 = vadd.f32 %v468_v45, %v455_v57  ;;  %v1801_v0 = vadd.f32 %v460_v40, %v453_v59  ;;  %v591_v40 = vld [vmem:[#allocation8 + $0x358] sm:$0xff]  ;;  %v492_v42 = vld [vmem:[#allocation8 + $0x40] sm:$0xff]  ;;  %v489_v45 = vld [vmem:[#allocation8 + $0x28] sm:$0xff] }
 0x180   :  { %v479_v60 = vmax.f32 %v473_v52, 0.0  ;;  %v480_v61 = vmax.f32 %v474_v53, 0.0  ;;  %v478_v55 = vmax.f32 %v1789_v56, 0.0  ;;  %v482_v22 = vmax.f32 %v1792_v58, 0.0  ;;  %v588_v43 = vld [vmem:[#allocation8 + $0x340] sm:$0xff]  ;;  %v585_v46 = vld [vmem:[#allocation8 + $0x328] sm:$0xff] }
 0x181   :  { %v483_v2 = vmax.f32 %v1796_v48, 0.0  ;;  %v481_v4 = vmax.f32 %v1801_v0, 0.0  ;;  %v486_v50 = vld [vmem:[#allocation8 + $0x10] sm:$0xff]  ;;  %v1167_v53 = vld [vmem:[#allocation5 + $0x2f8] sm:$0xff]  ;;  %v1117_v57 = vld [vmem:[#allocation5 + $0x168] sm:$0xff] }
 0x182   :  { %692 = vmatprep.mubr.f32.mxu1 %v479_v60  ;;  %770 = vmatmul.mubr.f32.vlgmr.msra.gmra.mxu0 %v480_v61  ;;  %v582_v51 = vld [vmem:[#allocation8 + $0x310] sm:$0xff]  ;;  %v1119_v59 = vld [vmem:[#allocation5 + $0x178] sm:$0xff]  ;;  %v1109_v58 = vld [vmem:[#allocation5 + $0x128] sm:$0xff] }
 0x183   :  { %1396 = vmatpush3.msra.mxu0 %v531_v62  ;;  %693 = vmatmul.mubr.f32.vlgmr.msra.gmra.mxu1 %v478_v55  ;;  %v1118_v52 = vld [vmem:[#allocation5 + $0x170] sm:$0xff]  ;;  %v1164_v62 = vld [vmem:[#allocation5 + $0x2e0] sm:$0xff]  ;;  %v1111_v56 = vld [vmem:[#allocation5 + $0x138] sm:$0xff] }
 0x184   :  { %1397 = vmatprep.subr.mxu0 %v576_v54  ;;  %1490 = vmatpush3.msra.mxu1 %v1745_v6  ;;  %v522_v6 = vld [vmem:[#allocation8 + $0x130] sm:$0xff]  ;;  %v1112_v54 = vld [vmem:[#allocation5 + $0x140] sm:$0xff]  ;;  %v1113_v48 = vld [vmem:[#allocation5 + $0x148] sm:$0xff] }
 0x185   :  { %698 = vmatprep.mubr.f32.mxu1 %v482_v22  ;;  %1398 = vmatpush3.msra.mxu0 %v528_v21  ;;  %v1116_v21 = vld [vmem:[#allocation5 + $0x160] sm:$0xff]  ;;  %v1155_v0 = vld [vmem:[#allocation5 + $0x298] sm:$0xff] }
 0x186   :  { %1491 = vmatprep.subr.mxu1 %v624_v63  ;;  %775 = vmatprep.mubr.f32.mxu0 %v1667_v5  ;;  %v567_v5 = vld [vmem:[#allocation8 + $0x298] sm:$0xff] }
 0x187   :  { %1399 = vmatprep.subr.mxu0 %v573_v49  ;;  %1492 = vmatpush3.msra.mxu1 %v624_v63  ;;  %v1158_v63 = vld [vmem:[#allocation5 + $0x2b0] sm:$0xff] }
 0x188   :  { %776 = vmatmul.mubr.f32.gmra.mxu0 %v483_v2  ;;  %1493 = vmatprep.subr.mxu1 %v621_v1  ;;  %v1106_v49 = vld [vmem:[#allocation5 + $0x110] sm:$0xff] }
 0x189   :  { %1400 = vmatpush3.msra.mxu0 %v525_v3  ;;  %699 = vmatmul.mubr.f32.gmra.mxu1 %v481_v4  ;;  %v1103_v3 = vld [vmem:[#allocation5 + $0xf8] sm:$0xff] }
 0x18a   :  { %1401 = vmatprep.subr.mxu0 %v570_v7  ;;  %846 = vmatprep.mubr.f32.mxu0 %v479_v60  ;;  %v1115_v60 = vld [vmem:[#allocation5 + $0x158] sm:$0xff]  ;;  %v1102_v7 = vld [vmem:[#allocation5 + $0xf0] sm:$0xff] }
 0x18b   :  { %1494 = vmatpush3.msra.mxu1 %v621_v1  ;;  %1402 = vmatpush3.msra.mxu0 %v522_v6  ;;  %v1110_v1 = vld [vmem:[#allocation5 + $0x130] sm:$0xff]  ;;  %v1152_v6 = vld [vmem:[#allocation5 + $0x280] sm:$0xff] }
 0x18c   :  { %1495 = vmatprep.subr.mxu1 %v618_v8  ;;  %1521 = vmatprep.mubr.f32.mxu1 %v480_v61  ;;  %v1114_v61 = vld [vmem:[#allocation5 + $0x150] sm:$0xff] }
 0x18d   :  { %1403 = vmatprep.subr.mxu0 %v567_v5  ;;  %1496 = vmatpush3.msra.mxu1 %v618_v8  ;;  %v1100_v8 = vld [vmem:[#allocation5 + $0xe0] sm:$0xff] }
 0x18e   :  { %1404 = vmatpush3.msra.mxu0 %v519_v9  ;;  %1497 = vmatprep.subr.mxu1 %v615_v10  ;;  %v1104_v5 = vld [vmem:[#allocation5 + $0x100] sm:$0xff]  ;;  %v1099_v9 = vld [vmem:[#allocation5 + $0xd8] sm:$0xff] }
 0x18f   :  { %1405 = vmatprep.subr.mxu0 %v564_v11  ;;  %1498 = vmatpush3.msra.mxu1 %v615_v10  ;;  %v1149_v10 = vld [vmem:[#allocation5 + $0x268] sm:$0xff] }
 0x190   :  { %1406 = vmatpush3.msra.mxu0 %v516_v12  ;;  %1499 = vmatprep.subr.mxu1 %v612_v13  ;;  %v1097_v11 = vld [vmem:[#allocation5 + $0xc8] sm:$0xff] }
 0x191   :  { %1407 = vmatprep.subr.mxu0 %v561_v14  ;;  %1500 = vmatpush3.msra.mxu1 %v612_v13  ;;  %v1101_v12 = vld [vmem:[#allocation5 + $0xe8] sm:$0xff]  ;;  %v1096_v13 = vld [vmem:[#allocation5 + $0xc0] sm:$0xff]  ;;  %v1146_v14 = vld [vmem:[#allocation5 + $0x250] sm:$0xff] }
 0x192   :  { %1408 = vmatpush3.msra.mxu0 %v513_v15  ;;  %1501 = vmatprep.subr.mxu1 %v609_v16  ;;  %v1094_v15 = vld [vmem:[#allocation5 + $0xb0] sm:$0xff] }
 0x193   :  { %1409 = vmatprep.subr.mxu0 %v558_v17  ;;  %1502 = vmatpush3.msra.mxu1 %v609_v16  ;;  %v1098_v16 = vld [vmem:[#allocation5 + $0xd0] sm:$0xff]  ;;  %v1093_v17 = vld [vmem:[#allocation5 + $0xa8] sm:$0xff] }
 0x194   :  { %1410 = vmatpush3.msra.mxu0 %v510_v18  ;;  %1503 = vmatprep.subr.mxu1 %v606_v19  ;;  %v1143_v18 = vld [vmem:[#allocation5 + $0x238] sm:$0xff] }
 0x195   :  { %1411 = vmatprep.subr.mxu0 %v555_v20  ;;  %1504 = vmatpush3.msra.mxu1 %v606_v19  ;;  %v1091_v19 = vld [vmem:[#allocation5 + $0x98] sm:$0xff] }
 0x196   :  { %1412 = vmatpush3.msra.mxu0 %v507_v23  ;;  %1505 = vmatprep.subr.mxu1 %v603_v24  ;;  %v1095_v20 = vld [vmem:[#allocation5 + $0xb8] sm:$0xff]  ;;  %v1090_v23 = vld [vmem:[#allocation5 + $0x90] sm:$0xff] }
 0x197   :  { %1413 = vmatprep.subr.mxu0 %v552_v25  ;;  %1506 = vmatpush3.msra.mxu1 %v603_v24  ;;  %v1140_v24 = vld [vmem:[#allocation5 + $0x220] sm:$0xff] }
 0x198   :  { %1414 = vmatpush3.msra.mxu0 %v504_v26  ;;  %1507 = vmatprep.subr.mxu1 %v600_v28  ;;  %v1088_v25 = vld [vmem:[#allocation5 + $0x80] sm:$0xff] }
 0x199   :  { %1415 = vmatprep.subr.mxu0 %v549_v29  ;;  %1508 = vmatpush3.msra.mxu1 %v600_v28  ;;  %v1092_v26 = vld [vmem:[#allocation5 + $0xa0] sm:$0xff]  ;;  %v1087_v28 = vld [vmem:[#allocation5 + $0x78] sm:$0xff]  ;;  %v1137_v29 = vld [vmem:[#allocation5 + $0x208] sm:$0xff] }
 0x19a   :  { %1416 = vmatpush3.msra.mxu0 %v501_v30  ;;  %1509 = vmatprep.subr.mxu1 %v597_v31  ;;  %v1085_v30 = vld [vmem:[#allocation5 + $0x68] sm:$0xff] }
 0x19b   :  { %1417 = vmatprep.subr.mxu0 %v546_v32  ;;  %1510 = vmatpush3.msra.mxu1 %v597_v31  ;;  %v1089_v31 = vld [vmem:[#allocation5 + $0x88] sm:$0xff]  ;;  %v1084_v32 = vld [vmem:[#allocation5 + $0x60] sm:$0xff] }
 0x19c   :  { %1418 = vmatpush3.msra.mxu0 %v498_v33  ;;  %1511 = vmatprep.subr.mxu1 %v594_v34  ;;  %v1134_v33 = vld [vmem:[#allocation5 + $0x1f0] sm:$0xff] }
 0x19d   :  { %1419 = vmatprep.subr.mxu0 %v543_v38  ;;  %1512 = vmatpush3.msra.mxu1 %v594_v34  ;;  %v1082_v34 = vld [vmem:[#allocation5 + $0x50] sm:$0xff] }
 0x19e   :  { %1420 = vmatpush3.msra.mxu0 %v495_v39  ;;  %1513 = vmatprep.subr.mxu1 %v591_v40  ;;  %v1086_v38 = vld [vmem:[#allocation5 + $0x70] sm:$0xff]  ;;  %v1081_v39 = vld [vmem:[#allocation5 + $0x48] sm:$0xff] }
 0x19f   :  { %1421 = vmatprep.subr.mxu0 %v540_v41  ;;  %1514 = vmatpush3.msra.mxu1 %v591_v40  ;;  %v1131_v40 = vld [vmem:[#allocation5 + $0x1d8] sm:$0xff] }
 0x1a0   :  { %1422 = vmatpush3.msra.mxu0 %v492_v42  ;;  %1515 = vmatprep.subr.mxu1 %v588_v43  ;;  %v1079_v41 = vld [vmem:[#allocation5 + $0x38] sm:$0xff] }
 0x1a1   :  { %1423 = vmatprep.subr.mxu0 %v537_v44  ;;  %1516 = vmatpush3.msra.mxu1 %v588_v43  ;;  %v1083_v42 = vld [vmem:[#allocation5 + $0x58] sm:$0xff]  ;;  %v1078_v43 = vld [vmem:[#allocation5 + $0x30] sm:$0xff]  ;;  %v1128_v44 = vld [vmem:[#allocation5 + $0x1c0] sm:$0xff] }
 0x1a2   :  { %1424 = vmatpush3.msra.mxu0 %v489_v45  ;;  %1517 = vmatprep.subr.mxu1 %v585_v46  ;;  %v1076_v45 = vld [vmem:[#allocation5 + $0x20] sm:$0xff] }
 0x1a3   :  { %1425 = vmatprep.subr.mxu0 %v534_v47  ;;  %1518 = vmatpush3.msra.mxu1 %v585_v46  ;;  %v1080_v46 = vld [vmem:[#allocation5 + $0x40] sm:$0xff]  ;;  %v1075_v47 = vld [vmem:[#allocation5 + $0x18] sm:$0xff] }
 0x1a4   :  { %1426 = vmatpush3.msra.mxu0 %v486_v50  ;;  %1519 = vmatprep.subr.mxu1 %v582_v51  ;;  %v1125_v50 = vld [vmem:[#allocation5 + $0x1a8] sm:$0xff] }
 0x1a5   :  { %847 = vmatmul.mubr.f32.vlgmr.msra.gmra.mxu0 %v478_v55  ;;  %1520 = vmatpush3.msra.mxu1 %v582_v51  ;;  %v1161_v55 = vld [vmem:[#allocation5 + $0x2c8] sm:$0xff] }
 0x1a6   :  { %851 = vmatprep.mubr.f32.mxu0 %v482_v22  ;;  %1522 = vmatmul.mubr.f32.vlgmr.msra.gmra.mxu1 %v483_v2  ;;  %v1108_v22 = vld [vmem:[#allocation5 + $0x120] sm:$0xff]  ;;  %v1105_v2 = vld [vmem:[#allocation5 + $0x108] sm:$0xff] }
 0x1a7   :  { %1168 = vmatprep.subr.mxu0 %v1118_v52  ;;  %1451 = vmatprep.subr.mxu1 %v1167_v53  ;;  %v1073_v51 = vld [vmem:[#allocation5 + $0x8] sm:$0xff]  ;;  %v1072_v53 = vld [vmem:[#allocation5] sm:$0xff] }
 0x1a8   :  { %1169 = vmatpush1.msra.mxu0 %v1117_v57  ;;  %1452 = vmatpush3.msra.mxu1 %v1119_v59  ;;  %v1077_v52 = vld [vmem:[#allocation5 + $0x28] sm:$0xff]  ;;  %v1122_v57 = vld [vmem:[#allocation5 + $0x190] sm:$0xff] }
 0x1a9   :  { %852 = vmatmul.mubr.f32.gmra.mxu0 %v481_v4  ;;  %1170 = vmatprep.subr.mxu0 %v1115_v60  ;;  %v1107_v4 = vld [vmem:[#allocation5 + $0x118] sm:$0xff]  ;;  %v1166_v59 = vld [vmem:[#allocation5 + $0x2f0] sm:$0xff] }
 0x1aa   :  { %1171 = vmatpush1.msra.mxu0 %v1114_v61  ;;  %1453 = vmatprep.subr.mxu1 %v1164_v62  ;;  %v1074_v60 = vld [vmem:[#allocation5 + $0x10] sm:$0xff]  ;;  %v1165_v61 = vld [vmem:[#allocation5 + $0x2e8] sm:$0xff]  ;;  %v1163_v62 = vld [vmem:[#allocation5 + $0x2d8] sm:$0xff] }
 0x1ab   :  { %1172 = vmatprep.subr.mxu0 %v1112_v54  ;;  %1454 = vmatpush3.msra.mxu1 %v1116_v21  ;;  %v1162_v54 = vld [vmem:[#allocation5 + $0x2d0] sm:$0xff]  ;;  %v1160_v21 = vld [vmem:[#allocation5 + $0x2c0] sm:$0xff] }
 0x1ac   :  { %1173 = vmatpush1.msra.mxu0 %v1111_v56  ;;  %1455 = vmatprep.subr.mxu1 %v1161_v55  ;;  %v1547_v56 = vld [vmem:[#allocation2 + $0x8] sm:$0xff]  ;;  %v1159_v55 = vld [vmem:[#allocation5 + $0x2b8] sm:$0xff] }
 0x1ad   :  { %1174 = vmatprep.subr.mxu0 %v1109_v58  ;;  %1456 = vmatpush3.msra.mxu1 %v1113_v48  ;;  %v1548_v58 = vld [vmem:[#allocation2] sm:$0xff]  ;;  %v1157_v48 = vld [vmem:[#allocation5 + $0x2a8] sm:$0xff] }
 0x1ae   :  { %1175 = vmatpush1.msra.mxu0 %v1108_v22  ;;  %1457 = vmatprep.subr.mxu1 %v1158_v63  ;;  %v1156_v22 = vld [vmem:[#allocation5 + $0x2a0] sm:$0xff]  ;;  %v1549_v63 = vld [vmem:[#allocation2 + $0x18] sm:$0xff] }
 0x1af   :  { %1176 = vmatprep.subr.mxu0 %v1106_v49  ;;  %1458 = vmatpush3.msra.mxu1 %v1110_v1  ;;  %v1154_v49 = vld [vmem:[#allocation5 + $0x290] sm:$0xff]  ;;  %v1153_v1 = vld [vmem:[#allocation5 + $0x288] sm:$0xff] }
 0x1b0   :  { %1177 = vmatpush1.msra.mxu0 %v1105_v2  ;;  %1459 = vmatprep.subr.mxu1 %v1155_v0  ;;  %v1550_v2 = vld [vmem:[#allocation2 + $0x10] sm:$0xff]  ;;  %v1151_v0 = vld [vmem:[#allocation5 + $0x278] sm:$0xff] }
 0x1b1   :  { %1178 = vmatprep.subr.mxu0 %v1103_v3  ;;  %1460 = vmatpush3.msra.mxu1 %v1107_v4  ;;  %v1150_v3 = vld [vmem:[#allocation5 + $0x270] sm:$0xff]  ;;  %v1148_v4 = vld [vmem:[#allocation5 + $0x260] sm:$0xff] }
 0x1b2   :  { %1179 = vmatpush1.msra.mxu0 %v1102_v7  ;;  %1461 = vmatprep.subr.mxu1 %v1152_v6  ;;  %v1147_v7 = vld [vmem:[#allocation5 + $0x258] sm:$0xff]  ;;  %v1145_v6 = vld [vmem:[#allocation5 + $0x248] sm:$0xff] }
 0x1b3   :  { %1180 = vmatprep.subr.mxu0 %v1100_v8  ;;  %1462 = vmatpush3.msra.mxu1 %v1104_v5  ;;  %v1144_v8 = vld [vmem:[#allocation5 + $0x240] sm:$0xff]  ;;  %v1142_v5 = vld [vmem:[#allocation5 + $0x230] sm:$0xff] }
 0x1b4   :  { %1181 = vmatpush1.msra.mxu0 %v1099_v9  ;;  %1463 = vmatprep.subr.mxu1 %v1149_v10  ;;  %v1141_v9 = vld [vmem:[#allocation5 + $0x228] sm:$0xff]  ;;  %v1139_v10 = vld [vmem:[#allocation5 + $0x218] sm:$0xff] }
 0x1b5   :  { %1182 = vmatprep.subr.mxu0 %v1097_v11  ;;  %1464 = vmatpush3.msra.mxu1 %v1101_v12  ;;  %v1138_v11 = vld [vmem:[#allocation5 + $0x210] sm:$0xff]  ;;  %v1136_v12 = vld [vmem:[#allocation5 + $0x200] sm:$0xff] }
 0x1b6   :  { %1183 = vmatpush1.msra.mxu0 %v1096_v13  ;;  %1465 = vmatprep.subr.mxu1 %v1146_v14  ;;  %v1135_v13 = vld [vmem:[#allocation5 + $0x1f8] sm:$0xff]  ;;  %v1133_v14 = vld [vmem:[#allocation5 + $0x1e8] sm:$0xff] }
 0x1b7   :  { %1184 = vmatprep.subr.mxu0 %v1094_v15  ;;  %1466 = vmatpush3.msra.mxu1 %v1098_v16  ;;  %v1132_v15 = vld [vmem:[#allocation5 + $0x1e0] sm:$0xff]  ;;  %v1130_v16 = vld [vmem:[#allocation5 + $0x1d0] sm:$0xff] }
 0x1b8   :  { %1185 = vmatpush1.msra.mxu0 %v1093_v17  ;;  %1467 = vmatprep.subr.mxu1 %v1143_v18  ;;  %v1129_v17 = vld [vmem:[#allocation5 + $0x1c8] sm:$0xff]  ;;  %v1127_v18 = vld [vmem:[#allocation5 + $0x1b8] sm:$0xff] }
 0x1b9   :  { %1186 = vmatprep.subr.mxu0 %v1091_v19  ;;  %1468 = vmatpush3.msra.mxu1 %v1095_v20  ;;  %v1126_v19 = vld [vmem:[#allocation5 + $0x1b0] sm:$0xff]  ;;  %v1124_v20 = vld [vmem:[#allocation5 + $0x1a0] sm:$0xff] }
 0x1ba   :  { %1187 = vmatpush1.msra.mxu0 %v1090_v23  ;;  %1469 = vmatprep.subr.mxu1 %v1140_v24  ;;  %v1123_v23 = vld [vmem:[#allocation5 + $0x198] sm:$0xff]  ;;  %v1121_v24 = vld [vmem:[#allocation5 + $0x188] sm:$0xff] }
 0x1bb   :  { %1188 = vmatprep.subr.mxu0 %v1088_v25  ;;  %1470 = vmatpush3.msra.mxu1 %v1092_v26  ;;  %v1120_v25 = vld [vmem:[#allocation5 + $0x180] sm:$0xff] }
 0x1bc   :  { %1189 = vmatpush1.msra.mxu0 %v1087_v28  ;;  %1471 = vmatprep.subr.mxu1 %v1137_v29 }
 0x1bd   :  { %1190 = vmatprep.subr.mxu0 %v1085_v30  ;;  %1472 = vmatpush3.msra.mxu1 %v1089_v31 }
 0x1be   :  { %1191 = vmatpush1.msra.mxu0 %v1084_v32  ;;  %1473 = vmatprep.subr.mxu1 %v1134_v33 }
 0x1bf   :  { %1192 = vmatprep.subr.mxu0 %v1082_v34  ;;  %1474 = vmatpush3.msra.mxu1 %v1086_v38 }
 0x1c0   :  { %1193 = vmatpush1.msra.mxu0 %v1081_v39  ;;  %1475 = vmatprep.subr.mxu1 %v1131_v40 }
 0x1c1   :  { %1194 = vmatprep.subr.mxu0 %v1079_v41  ;;  %1476 = vmatpush3.msra.mxu1 %v1083_v42 }
 0x1c2   :  { %1195 = vmatpush1.msra.mxu0 %v1078_v43  ;;  %1477 = vmatprep.subr.mxu1 %v1128_v44 }
 0x1c3   :  { %1196 = vmatprep.subr.mxu0 %v1076_v45  ;;  %1478 = vmatpush3.msra.mxu1 %v1080_v46 }
 0x1c4   :  { %1197 = vmatpush1.msra.mxu0 %v1075_v47  ;;  %1479 = vmatprep.subr.mxu1 %v1125_v50 }
 0x1c5   :  { %1198 = vmatprep.subr.mxu0 %v1073_v51  ;;  %1480 = vmatpush3.msra.mxu1 %v1077_v52 }
 0x1c6   :  { %1199 = vmatpush1.msra.mxu0 %v1072_v53  ;;  %1481 = vmatprep.subr.mxu1 %v1122_v57 }
 0x1c7   :  { %1200 = vmatprep.subr.mxu0 %v1166_v59  ;;  %1482 = vmatpush3.msra.mxu1 %v1074_v60 }
 0x1c8   :  { %1201 = vmatpush2.msra.mxu0 %v1165_v61  ;;  %1309 = vmatprep.mubr.f32.mxu1 %v1547_v56 }
 0x1c9   :  { %1202 = vmatprep.subr.mxu0 %v1163_v62  ;;  %1310 = vmatmul.mubr.f32.vlgmr.msra.gmra.mxu1 %v1548_v58 }
 0x1ca   :  { %1203 = vmatpush2.msra.mxu0 %v1162_v54  ;;  %1232 = vmatprep.mubr.f32.mxu0 %v1547_v56 }
 0x1cb   :  { %1204 = vmatprep.subr.mxu0 %v1160_v21  ;;  %1314 = vmatprep.mubr.f32.mxu1 %v1549_v63 }
 0x1cc   :  { %1205 = vmatpush2.msra.mxu0 %v1159_v55 }
 0x1cd   :  { %1206 = vmatprep.subr.mxu0 %v1157_v48  ;;  %1315 = vmatmul.mubr.f32.gmra.mxu1 %v1550_v2 }
 0x1ce   :  { %1207 = vmatpush2.msra.mxu0 %v1156_v22 }
 0x1cf   :  { %1208 = vmatprep.subr.mxu0 %v1154_v49 }
 0x1d0   :  { %1209 = vmatpush2.msra.mxu0 %v1153_v1 }
 0x1d1   :  { %1210 = vmatprep.subr.mxu0 %v1151_v0 }
 0x1d2   :  { %1211 = vmatpush2.msra.mxu0 %v1150_v3 }
 0x1d3   :  { %1212 = vmatprep.subr.mxu0 %v1148_v4 }
 0x1d4   :  { %1213 = vmatpush2.msra.mxu0 %v1147_v7 }
 0x1d5   :  { %1214 = vmatprep.subr.mxu0 %v1145_v6 }
 0x1d6   :  { %1215 = vmatpush2.msra.mxu0 %v1144_v8 }
 0x1d7   :  { %1216 = vmatprep.subr.mxu0 %v1142_v5 }
 0x1d8   :  { %1217 = vmatpush2.msra.mxu0 %v1141_v9 }
 0x1d9   :  { %1218 = vmatprep.subr.mxu0 %v1139_v10 }
 0x1da   :  { %1219 = vmatpush2.msra.mxu0 %v1138_v11 }
 0x1db   :  { %1220 = vmatprep.subr.mxu0 %v1136_v12 }
 0x1dc   :  { %1221 = vmatpush2.msra.mxu0 %v1135_v13 }
 0x1dd   :  { %1222 = vmatprep.subr.mxu0 %v1133_v14 }
 0x1de   :  { %1223 = vmatpush2.msra.mxu0 %v1132_v15 }
 0x1df   :  { %1224 = vmatprep.subr.mxu0 %v1130_v16 }
 0x1e0   :  { %1225 = vmatpush2.msra.mxu0 %v1129_v17 }
 0x1e1   :  { %1226 = vmatprep.subr.mxu0 %v1127_v18 }
 0x1e2   :  { %1227 = vmatpush2.msra.mxu0 %v1126_v19 }
 0x1e3   :  { %1228 = vmatprep.subr.mxu0 %v1124_v20 }
 0x1e4   :  { %1229 = vmatpush2.msra.mxu0 %v1123_v23 }
 0x1e5   :  { %1230 = vmatprep.subr.mxu0 %v1121_v24 }
 0x1e6   :  { %1231 = vmatpush2.msra.mxu0 %v1120_v25 }
 0x1e7   :  { %1233 = vmatmul.mubr.f32.vlgmr.msra.gmra.mxu0 %v1548_v58 }
 0x1e8   :  { %1238 = vmatprep.mubr.f32.mxu0 %v1549_v63 }
 0x1eb   :  { %1239 = vmatmul.mubr.f32.gmra.mxu0 %v1550_v2 }
 0x242   :  { %v771_v26 = vpop.f32.mrf.mxu0 }
 0x243   :  { %v694_v28 = vpop.f32.mrf.mxu1 }
 0x244   :  { %v773_v29 = vpop.f32.mrf.mxu0  ;;  %v772_v33 = vadd.f32 %v771_v26, %v694_v28 }
 0x245   :  { %v696_v30 = vpop.f32.mrf.mxu1 }
 0x246   :  { %v774_v40 = vadd.f32 %v773_v29, %v696_v30 }
 0x248   :  { %v777_v31 = vpop.f32.mrf.mxu0 }
 0x249   :  { %v700_v32 = vpop.f32.mrf.mxu1 }
 0x24a   :  { %v778_v34 = vadd.f32 %v777_v31, %v700_v32  ;;  %v779_v38 = vpop.f32.mrf.mxu0 }
 0x24b   :  { %v702_v39 = vpop.f32.mrf.mxu1 }
 0x24c   :  { %v934_v41 = vadd.f32 %v778_v34, %v772_v33  ;;  %v780_v42 = vadd.f32 %v779_v38, %v702_v39 }
 0x24e   :  { %v935_v43 = vrot.slane %v934_v41, 4  ;;  %v941_v44 = vadd.f32 %v780_v42, %v774_v40 }
 0x250   :  { %v936_v45 = vadd.f32 %v935_v43, %v934_v41  ;;  %v942_v46 = vrot.slane %v941_v44, 4 }
 0x252   :  { %v937_v47 = vrot.slane %v936_v45, 2  ;;  %v943_v50 = vadd.f32 %v942_v46, %v941_v44 }
 0x254   :  { %v944_v51 = vrot.slane %v943_v50, 2  ;;  %v938_v52 = vadd.f32 %v937_v47, %v936_v45 }
 0x256   :  { %v945_v53 = vadd.f32 %v944_v51, %v943_v50  ;;  %v939_v59 = vrot.slane %v938_v52, 1 }
 0x258   :  { %v946_v57 = vrot.slane %v945_v53, 1  ;;  %v940_v61 = vadd.f32 %v939_v59, %v938_v52 }
 0x25a   :  { %v947_v60 = vadd.f32 %v946_v57, %v945_v53  ;;  %v955_v54 = vmul.f32 0.0625, %v940_v61 }
 0x25c   :  { %v956_v62 = vmul.f32 0.0625, %v947_v60  ;;  %v1825_v58 = vsub.f32 %v772_v33, %v955_v54  ;;  %v1827_v48 = vsub.f32 %v778_v34, %v955_v54 }
 0x25e   :  { %v1821_v21 = vsub.f32 %v774_v40, %v956_v62  ;;  %v1823_v56 = vsub.f32 %v780_v42, %v956_v62  ;;  %v964_v0 = vmul.f32 %v1825_v58, %v1825_v58  ;;  %v967_v3 = vmul.f32 %v1827_v48, %v1827_v48 }
 0x260   :  { %v965_v49 = vmul.f32 %v1821_v21, %v1821_v21  ;;  %v968_v1 = vmul.f32 %v1823_v56, %v1823_v56  ;;  %v970_v9 = vadd.f32 %v967_v3, %v964_v0  ;;  %v932_v0 = vld [vmem:[%s1868_s6] sm:$0x7]  ;;  %s1669_s6 = smov [#allocation10]  }
 0x262   :  { %v977_v8 = vadd.f32 %v968_v1, %v965_v49  ;;  %v971_v14 = vrot.slane %v970_v9, 4 }
 0x264   :  { %v978_v12 = vrot.slane %v977_v8, 4  ;;  %v972_v18 = vadd.f32 %v971_v14, %v970_v9 }
 0x265   :  { %v1427_v55 = vpop.f32.mrf.mxu0 }
 0x266   :  { %v1523_v22 = vpop.f32.mrf.mxu1  ;;  %v979_v16 = vadd.f32 %v978_v12, %v977_v8  ;;  %v973_v24 = vrot.slane %v972_v18, 2 }
 0x267   :  { %v1428_v63 = vpop.f32.mrf.mxu0 }
 0x268   :  { %v1429_v4 = vadd.f32 %v1428_v63, %v1427_v55  ;;  %v923_v7 = vpop.f32.mrf.mxu1  ;;  %v980_v20 = vrot.slane %v979_v16, 2  ;;  %v974_v29 = vadd.f32 %v973_v24, %v972_v18 }
 0x269   :  { %v1430_v2 = vpop.f32.mrf.mxu0 }
 0x26a   :  { %v924_v10 = vadd.f32 %v1429_v4, %v923_v7  ;;  %v981_v26 = vadd.f32 %v980_v20, %v979_v16  ;;  %v975_v34 = vrot.slane %v974_v29, 1  ;;  %v933_v4 = vld [vmem:[%s1869_s7] sm:$0x7]  ;;  %s1343_s7 = sshll.u32 %s1669_s6, 4  ;;  %s1344_s7 = int_to_ptr.vmem [resolvable:$true] %s1343_s7 }
 0x26b   :  { %v1431_v6 = vpop.f32.mrf.mxu0  ;;  %v1054_v9 = vrot.slane %v933_v4, %v1772_v35  ;;  %v1058_v14 = vrot.slane %v933_v4, %v1774_v36  ;;  %s1631_s11 = scalar_lea.vmem %s1344_s7, 768  ;;  %p1636_p7 = scmp.lt.s32.totalorder %s1344_s7, %s1344_s7 }
 0x26c   :  { %v1432_v5 = vadd.f32 %v1431_v6, %v1430_v2  ;;  %v982_v31 = vrot.slane %v981_v26, 1  ;;  %v976_v42 = vadd.f32 %v975_v34, %v974_v29  ;;  %p1632_p6 = scmp.ne.s32.totalorder %s1344_s7, %s1631_s11  ;;  %p1637_p8 = scmp.lt.s32.totalorder %s1631_s11, %s1631_s11 }
 0x26e   :  { %v929_v11 = vadd.f32 %v1523_v22, %v1432_v5  ;;  %v983_v40 = vadd.f32 %v982_v31, %v981_v26  ;;  %v991_v46 = vmul.f32 0.0625, %v976_v42  ;;  %p1638_p9 = por %p1637_p8, %p1636_p7 }
 0x270   :  { %v948_v13 = vadd.f32 %v929_v11, %v924_v10  ;;  %v992_v44 = vmul.f32 0.0625, %v983_v40  ;;  %v994_v52 = vadd.f32 1e-05, %v991_v46  ;;  %p1639_p10 = pnand %p1638_p9, %p1632_p6 }
 0x272   :  { %v949_v15 = vrot.slane %v948_v13, 4  ;;  %v995_v50 = vadd.f32 1e-05, %v992_v44 }
 0x274   :  { %v950_v17 = vadd.f32 %v949_v15, %v948_v13  ;;  %1541 = vrsqrt.f32 %v995_v50 }
 0x275   :  { %1543 = vrsqrt.f32 %v994_v52 }
 0x276   :  { %v951_v19 = vrot.slane %v950_v17, 2 }
 0x278   :  { %v952_v23 = vadd.f32 %v951_v19, %v950_v17 }
 0x27a   :  { %v953_v25 = vrot.slane %v952_v23, 1 }
 0x27c   :  { %v954_v28 = vadd.f32 %v953_v25, %v952_v23 }
 0x27e   :  { %v957_v30 = vmul.f32 0.0625, %v954_v28 }
 0x280   :  { %v960_v32 = vsub.f32 %v924_v10, %v957_v30  ;;  %v963_v33 = vsub.f32 %v929_v11, %v957_v30  ;;  %v1062_v10 = vrot.slane %v933_v4, %v1776_v37 }
 0x281   :  { %v1542_v61 = vpop.eup %1541 }
 0x282   :  { %v966_v38 = vmul.f32 %v960_v32, %v960_v32  ;;  %v969_v39 = vmul.f32 %v963_v33, %v963_v33  ;;  %v1544_v62 = vpop.eup %1543 }
 0x283   :  { %v1003_v54 = vcombine.low %v1544_v62, %v1542_v61 }
 0x284   :  { %v984_v41 = vadd.f32 %v969_v39, %v966_v38 }
 0x285   :  { %v1010_v63 = vrot.slane %v1003_v54, %v1764_v27 }
 0x286   :  { %v985_v43 = vrot.slane %v984_v41, 4 }
 0x288   :  { %v986_v45 = vadd.f32 %v985_v43, %v984_v41 }
 0x289   :  { %v1483_v55 = vpop.f32.mrf.mxu1 }
 0x28a   :  { %v987_v47 = vrot.slane %v986_v45, 2 }
 0x28b   :  { %v1484_v2 = vpop.f32.mrf.mxu1 }
 0x28c   :  { %v988_v51 = vadd.f32 %v987_v47, %v986_v45  ;;  %v1485_v20 = vadd.f32 %v1484_v2, %v1483_v55 }
 0x28d   :  { %v1486_v5 = vpop.f32.mrf.mxu1 }
 0x28e   :  { %v989_v53 = vrot.slane %v988_v51, 1 }
 0x28f   :  { %v1487_v19 = vpop.f32.mrf.mxu1 }
 0x290   :  { %v990_v57 = vadd.f32 %v989_v53, %v988_v51  ;;  %v1488_v29 = vadd.f32 %v1487_v19, %v1486_v5 }
 0x292   :  { %v993_v59 = vmul.f32 0.0625, %v990_v57 }
 0x294   :  { %v996_v60 = vadd.f32 1e-05, %v993_v59 }
 0x296   :  { %1545 = vrsqrt.f32 %v996_v60 }
 0x2a3   :  { %v1546_v22 = vpop.eup %1545 }
 0x2a4   :  { %v1017_v49 = vrot.slane %v1546_v22, %v1764_v27 }
 0x2a6   :  { %v1018_v1 = vcombine.low %v1010_v63, %v1017_v49 }
 0x2a7   :  { %v1234_v3 = vpop.f32.mrf.mxu0 }
 0x2a8   :  { %v1025_v7 = vrot.slane %v1018_v1, %v1764_v27 }
 0x2a9   :  { %v1236_v8 = vpop.f32.mrf.mxu0 }
 0x2aa   :  { %v1027_v6 = vmul.f32 %v1025_v7, %v932_v0 }
 0x2ab   :  { %v1240_v18 = vpop.f32.mrf.mxu0 }
 0x2ac   :  { %v1032_v11 = vrot.slane %v1027_v6, %v1772_v35  ;;  %v1040_v12 = vrot.slane %v1027_v6, %v1776_v37  ;;  %v1036_v13 = vrot.slane %v1027_v6, %v1774_v36 }
 0x2ae   :  { %v1044_v15 = vmul.f32 %v1032_v11, %v1825_v58  ;;  %v1046_v16 = vmul.f32 %v1040_v12, %v960_v32  ;;  %v1045_v27 = vmul.f32 %v1036_v13, %v1821_v21  ;;  %v1047_v17 = vmul.f32 %v1032_v11, %v1827_v48  ;;  %v1242_v21 = vpop.f32.mrf.mxu0 }
 0x2af   :  { %v1049_v23 = vmul.f32 %v1040_v12, %v963_v33  ;;  %v1048_v24 = vmul.f32 %v1036_v13, %v1823_v56 }
 0x2b0   :  { %v1066_v35 = vadd.f32 %v1054_v9, %v1044_v15  ;;  %v1068_v25 = vadd.f32 %v1062_v10, %v1046_v16  ;;  %v1067_v37 = vadd.f32 %v1058_v14, %v1045_v27  ;;  %v1069_v26 = vadd.f32 %v1054_v9, %v1047_v17 }
 0x2b1   :  { %v1071_v28 = vadd.f32 %v1062_v10, %v1049_v23  ;;  %v1070_v36 = vadd.f32 %v1058_v14, %v1048_v24 }
 0x2b2   :  { %v1320_v30 = vadd.f32 %v1234_v3, %v1066_v35  ;;  %v1322_v58 = vadd.f32 %v1485_v20, %v1068_v25  ;;  %v1321_v31 = vadd.f32 %v1236_v8, %v1067_v37  ;;  %v1323_v32 = vadd.f32 %v1240_v18, %v1069_v26 }
 0x2b3   :  { %v1325_v48 = vadd.f32 %v1488_v29, %v1071_v28  ;;  %v1324_v34 = vadd.f32 %v1242_v21, %v1070_v36 }
 0x2b4   :  { %v1326_v38 = vmax.f32 %v1320_v30, 0.0  ;;  %v1328_v33 = vmax.f32 %v1322_v58, 0.0  ;;  %v1327_v39 = vmax.f32 %v1321_v31, 0.0  ;;  %v1329_v56 = vmax.f32 %v1323_v32, 0.0 }
 0x2b5   :  { %v1331_v40 = vmax.f32 %v1325_v48, 0.0  ;;  %v1330_v41 = vmax.f32 %v1324_v34, 0.0 }
 0x2b6   :  { %1332 = vst [vmem:[#allocation10] sm:$0xff] %v1326_v38  ;;  %1334 = vst [vmem:[#allocation10 + $0x10] sm:$0xff] %v1328_v33 }
 0x2b7   :  { %1333 = vst [vmem:[#allocation10 + $0x8] sm:$0xff] %v1327_v39  ;;  %1335 = vst [vmem:[#allocation10 + $0x18] sm:$0xff] %v1329_v56 }
 0x2b8   :  { %1337 = vst [vmem:[#allocation10 + $0x28] sm:$0xff] %v1331_v40  ;;  %1336 = vst [vmem:[#allocation10 + $0x20] sm:$0xff] %v1330_v41 }
 0x2b9   :  { %1642 = shalt.err (!%p1639_p10)
}
 0x2ba   :  { %1349 = dma.vmem_to_hbm [thread:$0]  %s1344_s7, 768, %s1870_s8, [#allocation4], %s1660_s30, %s1660_s30, %s1661_s9  }
 0x2bb   :  { %1657 = dma.done.wait [#allocation4], 768  }
 0x2bc   :  { %1658 = vsyncadd [#allocation4], 4294966528 }
 0x2bd   :  { %1353 = vsyncpa [#allocation3], 1 }
 0x2be   :  { %1354 = vsyncpa [#allocation6], 1 }
 0x2bf   :  { %1355 = vsyncpa [#allocation9], 1 }
 0x2c0   :  { %1356 = vsyncpa [#allocation4], 1 }

</bundles_post_ra>
